<compile_context>
chip_gen: v7x
topology: tpu7x:2x2x1
jax: 0.10.0
libtpu: 0.0.40
codegen_flags: <defaults>
</compile_context>

<pallas_src>
import jax
import jax.numpy as jnp
from jax import lax
from jax.experimental import pallas as pl
from jax.experimental.pallas import tpu as pltpu


def _make_kernel(C: int, G: int, W: int, TR: int):
    """Kernel closure over static shape parameters.

    Refs:
      w_ref:     (G, 9*C)          bf16  flattened conv weights (resident)
      b_ref:     (G, 1)            f32   bias (resident)
      x_ref:     (1, C, H+2, W+2)  f32   full zero-padded image of this batch elem
      o_ref:     (1, C+G, TR, W)   f32   output row-tile (identity + conv)
      patch_ref: (9*C, W)          f32   per-row im2col scratch
    """

    def kernel(w_ref, b_ref, x_ref, o_ref, patch_ref):
        j = pl.program_id(1)
        r0 = j * TR                                   # first output row of this tile

        # Identity channels: exact f32 copy of the interior of the padded input.
        o_ref[0, 0:C, :, :] = x_ref[0, :, pl.ds(r0 + 1, TR), 1:1 + W].astype(o_ref.dtype)

        w = w_ref[...]                                # (G, 9C) bf16, load once
        b = b_ref[...]                                # (G, 1)  f32

        for rr in range(TR):                          # static unroll over tile rows
            # Build the (9C, W) patch block from 9 shifted slices (3 row loads).
            for dy in range(3):
                prow = x_ref[0, :, r0 + rr + dy, :]   # (C, W+2) f32
                for dx in range(3):
                    t = dy * 3 + dx
                    patch_ref[t * C:(t + 1) * C, :] = prow[:, dx:dx + W]
            # One MXU dot per output row: bf16 x bf16 -> f32 accumulation.
            acc = jnp.dot(w, patch_ref[...].astype(jnp.bfloat16),
                          preferred_element_type=jnp.float32)   # (G, W)
            acc = jnp.maximum(acc + b, 0.0)                      # bias + ReLU in f32
            o_ref[0, C:C + G, rr, :] = acc.astype(o_ref.dtype)

    return kernel


def _pick_row_tile(N: int, H: int) -> int:
    """Row-tile size TR: must divide H and be a multiple of 8 (layout rule) or == H.
    Capped at 64 rows of unroll; prefer enough grid steps for pipelining/megacore."""
    cands = [t for t in range(8, min(H, 64) + 1, 8) if H % t == 0]
    if not cands:
        return H                                      # block dim == full dim is legal
    for min_steps in (8, 4, 2, 1):
        ok = [t for t in cands if N * (H // t) >= min_steps]
        if ok:
            return max(ok)
    return max(cands)


def residual_block_forward(x, w_hwio, b):
    """Equivalent of _ResidualBlock.forward (NCHW in, NCHW out).

    x: (N, C, H, W), w_hwio: (3, 3, C, G), b: (G,)  ->  (N, C+G, H, W)
    """
    N, C, H, W = x.shape
    G = w_hwio.shape[-1]
    assert w_hwio.shape == (3, 3, C, G)
    itemsize = x.dtype.itemsize

    # Only copy made in HBM: one zero-padded image (and a tiny weight relayout).
    xpad = jnp.pad(x, ((0, 0), (0, 0), (1, 1), (1, 1)))           # (N, C, H+2, W+2)
    # w_flat[g, (dy*3+dx)*C + c] = w_hwio[dy, dx, c, g]  -- matches patch row order.
    w_flat = jnp.transpose(w_hwio, (3, 0, 1, 2)).reshape(G, 9 * C).astype(jnp.bfloat16)
    b2 = b.reshape(G, 1).astype(jnp.float32)

    # TODO(synk): for very large images the full padded (C, H+2, W+2) plane may not
    # fit VMEM; that case needs manual halo DMA (pl.ANY + make_async_copy) instead
    # of the full-image in_spec used here.
    TR = _pick_row_tile(N, H)
    grid = (N, H // TR)
    kernel = _make_kernel(C, G, W, TR)

    cost = pl.CostEstimate(
        flops=2 * N * H * W * G * 9 * C,
        transcendentals=0,
        bytes_accessed=int(xpad.size * itemsize + w_flat.size * 2 + b2.size * 4
                           + N * (C + G) * H * W * itemsize),
    )

    out = pl.pallas_call(
        kernel,
        out_shape=jax.ShapeDtypeStruct((N, C + G, H, W), x.dtype),
        grid_spec=pltpu.PrefetchScalarGridSpec(
            num_scalar_prefetch=0,
            grid=grid,
            in_specs=[
                pl.BlockSpec((G, 9 * C), lambda n, j: (0, 0)),                   # weights
                pl.BlockSpec((G, 1), lambda n, j: (0, 0)),                       # bias
                pl.BlockSpec((1, C, H + 2, W + 2), lambda n, j: (n, 0, 0, 0)),   # padded x
            ],
            out_specs=pl.BlockSpec((1, C + G, TR, W), lambda n, j: (n, 0, j, 0)),
            scratch_shapes=[pltpu.VMEM((9 * C, W), jnp.float32)],
        ),
        compiler_params=pltpu.CompilerParams(
            dimension_semantics=("parallel", "parallel")),
        cost_estimate=cost,
    )(w_flat, b2, xpad)
    return out


def _reference(x, w, b, *, cast_to_bf16=False):
    """Pure-JAX reference. If cast_to_bf16, the conv inputs are rounded to bf16
    (to mirror the kernel's MXU operand precision) while the identity stays f32."""
    xc, wc = x, w
    if cast_to_bf16:
        xc = x.astype(jnp.bfloat16).astype(jnp.float32)
        wc = w.astype(jnp.bfloat16).astype(jnp.float32)
    out = lax.conv_general_dilated(
        xc, wc, window_strides=(1, 1), padding=((1, 1), (1, 1)),
        dimension_numbers=("NCHW", "HWIO", "NCHW"),
        precision=lax.Precision.HIGHEST)
    out = jax.nn.relu(out + b.reshape(1, -1, 1, 1))
    return jnp.concatenate([x, out], axis=1)


if __name__ == "__main__":
    key = jax.random.PRNGKey(0)
    k_x, k_w, k_b = jax.random.split(key, 3)

    N, C, G, H, W = 2, 4, 8, 16, 16   # channels=4, growth_channels=8
    x = jax.random.normal(k_x, (N, C, H, W), dtype=jnp.float32)
    w = jax.random.normal(k_w, (3, 3, C, G), dtype=jnp.float32) * 0.1
    b = jax.random.normal(k_b, (G,), dtype=jnp.float32) * 0.1

    out = jax.block_until_ready(residual_block_forward(x, w, b))
    assert out.shape == (N, C + G, H, W), out.shape

    # Identity channels must be a bit-exact copy of x.
    assert jnp.array_equal(out[:, :C], x), "identity channels differ"

    # Tight check vs a reference using the same bf16-rounded matmul inputs.
    ref_bf16 = jax.block_until_ready(_reference(x, w, b, cast_to_bf16=True))
    assert jnp.allclose(out, ref_bf16, atol=1e-4, rtol=1e-4), "mismatch vs bf16-input reference"

    # Loose check vs the full-f32 reference (bf16 MXU operand rounding tolerance).
    ref_f32 = jax.block_until_ready(_reference(x, w, b, cast_to_bf16=False))
    assert jnp.allclose(out, ref_f32, atol=5e-2, rtol=5e-2), "mismatch vs f32 reference"

    print("KERNEL_OK")
</pallas_src>

<mosaic_0001>
module attributes {stable_mosaic.version = 11 : i64} {
  func.func @kernel(%arg0: i32, %arg1: i32, %arg2: memref<8x36xbf16, #tpu.memory_space<vmem>>, %arg3: memref<8x1xf32, #tpu.memory_space<vmem>>, %arg4: memref<1x4x18x18xf32, #tpu.memory_space<vmem>>, %arg5: memref<1x12x8x16xf32, #tpu.memory_space<vmem>>, %arg6: memref<36x16xf32, #tpu.memory_space<vmem>>) attributes {dimension_semantics = [#tpu.dimension_semantics<parallel>, #tpu.dimension_semantics<parallel>], iteration_bounds = array<i64: 2, 2>, scalar_prefetch = 0 : i64, scratch_operands = 1 : i64, tpu.core_type = #tpu.core_type<tc>, window_params = [{pipeline_mode = #tpu.pipeline_mode<synchronous>, transform_indices = @transform_0, window_bounds = array<i64: 8, 36>}, {pipeline_mode = #tpu.pipeline_mode<synchronous>, transform_indices = @transform_1, window_bounds = array<i64: 8, 1>}, {transform_indices = @transform_2, window_bounds = array<i64: 1, 4, 18, 18>}, {transform_indices = @transform_3, window_bounds = array<i64: 1, 12, 8, 16>}]} {
    %c8_i32 = arith.constant 8 : i32
    %0 = arith.muli %arg1, %c8_i32 : i32
    %c1_i32 = arith.constant 1 : i32
    %1 = arith.addi %0, %c1_i32 : i32
    %c0 = arith.constant 0 : index
    %c0_0 = arith.constant 0 : index
    %2 = arith.index_cast %1 : i32 to index
    %c1 = arith.constant 1 : index
    %3 = vector.load %arg4[%c0, %c0_0, %2, %c1] : memref<1x4x18x18xf32, #tpu.memory_space<vmem>>, vector<1x4x8x16xf32>
    %4 = vector.shape_cast %3 : vector<1x4x8x16xf32> to vector<4x8x16xf32>
    %c0_1 = arith.constant 0 : index
    %c0_2 = arith.constant 0 : index
    %c0_3 = arith.constant 0 : index
    %c0_4 = arith.constant 0 : index
    %5 = vector.load %arg5[%c0_1, %c0_2, %c0_3, %c0_4] : memref<1x12x8x16xf32, #tpu.memory_space<vmem>>, vector<1x4x8x16xf32>
    %6 = vector.shape_cast %5 : vector<1x4x8x16xf32> to vector<4x8x16xf32>
    %7 = vector.shape_cast %4 : vector<4x8x16xf32> to vector<1x4x8x16xf32>
    tpu.vector_store %arg5[%c0_1, %c0_2, %c0_3, %c0_4], %7 {strides = array<i32>} : memref<1x12x8x16xf32, #tpu.memory_space<vmem>>, vector<1x4x8x16xf32>,
    %c0_5 = arith.constant 0 : index
    %c0_6 = arith.constant 0 : index
    %8 = vector.load %arg2[%c0_5, %c0_6] : memref<8x36xbf16, #tpu.memory_space<vmem>>, vector<8x36xbf16>
    %c0_7 = arith.constant 0 : index
    %c0_8 = arith.constant 0 : index
    %9 = vector.load %arg3[%c0_7, %c0_8] : memref<8x1xf32, #tpu.memory_space<vmem>>, vector<8x1xf32>
    %c0_i32 = arith.constant 0 : i32
    %10 = arith.addi %0, %c0_i32 : i32
    %c0_i32_9 = arith.constant 0 : i32
    %11 = arith.addi %10, %c0_i32_9 : i32
    %c0_10 = arith.constant 0 : index
    %c0_11 = arith.constant 0 : index
    %12 = arith.index_cast %11 : i32 to index
    %c0_12 = arith.constant 0 : index
    %13 = vector.load %arg4[%c0_10, %c0_11, %12, %c0_12] : memref<1x4x18x18xf32, #tpu.memory_space<vmem>>, vector<1x4x1x18xf32>
    %14 = vector.shape_cast %13 : vector<1x4x1x18xf32> to vector<4x18xf32>
    %15 = vector.extract_strided_slice %14 {offsets = [0, 0], sizes = [4, 16], strides = [1, 1]} : vector<4x18xf32> to vector<4x16xf32>
    %c0_13 = arith.constant 0 : index
    %c0_14 = arith.constant 0 : index
    %16 = vector.load %arg6[%c0_13, %c0_14] : memref<36x16xf32, #tpu.memory_space<vmem>>, vector<4x16xf32>
    tpu.vector_store %arg6[%c0_13, %c0_14], %15 {strides = array<i32>} : memref<36x16xf32, #tpu.memory_space<vmem>>, vector<4x16xf32>,
    %17 = vector.extract_strided_slice %14 {offsets = [0, 1], sizes = [4, 16], strides = [1, 1]} : vector<4x18xf32> to vector<4x16xf32>
    %c4 = arith.constant 4 : index
    %c0_15 = arith.constant 0 : index
    %18 = vector.load %arg6[%c4, %c0_15] : memref<36x16xf32, #tpu.memory_space<vmem>>, vector<4x16xf32>
    tpu.vector_store %arg6[%c4, %c0_15], %17 {strides = array<i32>} : memref<36x16xf32, #tpu.memory_space<vmem>>, vector<4x16xf32>,
    %19 = vector.extract_strided_slice %14 {offsets = [0, 2], sizes = [4, 16], strides = [1, 1]} : vector<4x18xf32> to vector<4x16xf32>
    %c8 = arith.constant 8 : index
    %c0_16 = arith.constant 0 : index
    %20 = vector.load %arg6[%c8, %c0_16] : memref<36x16xf32, #tpu.memory_space<vmem>>, vector<4x16xf32>
    tpu.vector_store %arg6[%c8, %c0_16], %19 {strides = array<i32>} : memref<36x16xf32, #tpu.memory_space<vmem>>, vector<4x16xf32>,
    %c0_i32_17 = arith.constant 0 : i32
    %21 = arith.addi %0, %c0_i32_17 : i32
    %c1_i32_18 = arith.constant 1 : i32
    %22 = arith.addi %21, %c1_i32_18 : i32
    %c0_19 = arith.constant 0 : index
    %c0_20 = arith.constant 0 : index
    %23 = arith.index_cast %22 : i32 to index
    %c0_21 = arith.constant 0 : index
    %24 = vector.load %arg4[%c0_19, %c0_20, %23, %c0_21] : memref<1x4x18x18xf32, #tpu.memory_space<vmem>>, vector<1x4x1x18xf32>
    %25 = vector.shape_cast %24 : vector<1x4x1x18xf32> to vector<4x18xf32>
    %26 = vector.extract_strided_slice %25 {offsets = [0, 0], sizes = [4, 16], strides = [1, 1]} : vector<4x18xf32> to vector<4x16xf32>
    %c12 = arith.constant 12 : index
    %c0_22 = arith.constant 0 : index
    %27 = vector.load %arg6[%c12, %c0_22] : memref<36x16xf32, #tpu.memory_space<vmem>>, vector<4x16xf32>
    tpu.vector_store %arg6[%c12, %c0_22], %26 {strides = array<i32>} : memref<36x16xf32, #tpu.memory_space<vmem>>, vector<4x16xf32>,
    %28 = vector.extract_strided_slice %25 {offsets = [0, 1], sizes = [4, 16], strides = [1, 1]} : vector<4x18xf32> to vector<4x16xf32>
    %c16 = arith.constant 16 : index
    %c0_23 = arith.constant 0 : index
    %29 = vector.load %arg6[%c16, %c0_23] : memref<36x16xf32, #tpu.memory_space<vmem>>, vector<4x16xf32>
    tpu.vector_store %arg6[%c16, %c0_23], %28 {strides = array<i32>} : memref<36x16xf32, #tpu.memory_space<vmem>>, vector<4x16xf32>,
    %30 = vector.extract_strided_slice %25 {offsets = [0, 2], sizes = [4, 16], strides = [1, 1]} : vector<4x18xf32> to vector<4x16xf32>
    %c20 = arith.constant 20 : index
    %c0_24 = arith.constant 0 : index
    %31 = vector.load %arg6[%c20, %c0_24] : memref<36x16xf32, #tpu.memory_space<vmem>>, vector<4x16xf32>
    tpu.vector_store %arg6[%c20, %c0_24], %30 {strides = array<i32>} : memref<36x16xf32, #tpu.memory_space<vmem>>, vector<4x16xf32>,
    %c0_i32_25 = arith.constant 0 : i32
    %32 = arith.addi %0, %c0_i32_25 : i32
    %c2_i32 = arith.constant 2 : i32
    %33 = arith.addi %32, %c2_i32 : i32
    %c0_26 = arith.constant 0 : index
    %c0_27 = arith.constant 0 : index
    %34 = arith.index_cast %33 : i32 to index
    %c0_28 = arith.constant 0 : index
    %35 = vector.load %arg4[%c0_26, %c0_27, %34, %c0_28] : memref<1x4x18x18xf32, #tpu.memory_space<vmem>>, vector<1x4x1x18xf32>
    %36 = vector.shape_cast %35 : vector<1x4x1x18xf32> to vector<4x18xf32>
    %37 = vector.extract_strided_slice %36 {offsets = [0, 0], sizes = [4, 16], strides = [1, 1]} : vector<4x18xf32> to vector<4x16xf32>
    %c24 = arith.constant 24 : index
    %c0_29 = arith.constant 0 : index
    %38 = vector.load %arg6[%c24, %c0_29] : memref<36x16xf32, #tpu.memory_space<vmem>>, vector<4x16xf32>
    tpu.vector_store %arg6[%c24, %c0_29], %37 {strides = array<i32>} : memref<36x16xf32, #tpu.memory_space<vmem>>, vector<4x16xf32>,
    %39 = vector.extract_strided_slice %36 {offsets = [0, 1], sizes = [4, 16], strides = [1, 1]} : vector<4x18xf32> to vector<4x16xf32>
    %c28 = arith.constant 28 : index
    %c0_30 = arith.constant 0 : index
    %40 = vector.load %arg6[%c28, %c0_30] : memref<36x16xf32, #tpu.memory_space<vmem>>, vector<4x16xf32>
    tpu.vector_store %arg6[%c28, %c0_30], %39 {strides = array<i32>} : memref<36x16xf32, #tpu.memory_space<vmem>>, vector<4x16xf32>,
    %41 = vector.extract_strided_slice %36 {offsets = [0, 2], sizes = [4, 16], strides = [1, 1]} : vector<4x18xf32> to vector<4x16xf32>
    %c32 = arith.constant 32 : index
    %c0_31 = arith.constant 0 : index
    %42 = vector.load %arg6[%c32, %c0_31] : memref<36x16xf32, #tpu.memory_space<vmem>>, vector<4x16xf32>
    tpu.vector_store %arg6[%c32, %c0_31], %41 {strides = array<i32>} : memref<36x16xf32, #tpu.memory_space<vmem>>, vector<4x16xf32>,
    %c0_32 = arith.constant 0 : index
    %c0_33 = arith.constant 0 : index
    %43 = vector.load %arg6[%c0_32, %c0_33] : memref<36x16xf32, #tpu.memory_space<vmem>>, vector<36x16xf32>
    %44 = arith.truncf %43 : vector<36x16xf32> to vector<36x16xbf16>
    %cst = arith.constant dense<0.000000e+00> : vector<8x16xf32>
    %45 = tpu.matmul %8, %44, %cst {dimension_numbers = #tpu.dot_dimension_numbers<[1], [0], [0], [1], [0, 0, 1, 1], [], []>} : vector<8x36xbf16>, vector<36x16xbf16>, vector<8x16xf32> -> vector<8x16xf32>
    %46 = vector.broadcast %9 : vector<8x1xf32> to vector<8x16xf32>
    %47 = arith.addf %45, %46 : vector<8x16xf32>
    %cst_34 = arith.constant 0.000000e+00 : f32
    %48 = vector.broadcast %cst_34 : f32 to vector<8x16xf32>
    %49 = arith.maximumf %47, %48 : vector<8x16xf32>
    %c0_35 = arith.constant 0 : index
    %c4_36 = arith.constant 4 : index
    %c0_37 = arith.constant 0 : index
    %c0_38 = arith.constant 0 : index
    %50 = vector.load %arg5[%c0_35, %c4_36, %c0_37, %c0_38] : memref<1x12x8x16xf32, #tpu.memory_space<vmem>>, vector<1x8x1x16xf32>
    %51 = vector.shape_cast %50 : vector<1x8x1x16xf32> to vector<8x16xf32>
    %52 = vector.shape_cast %49 : vector<8x16xf32> to vector<1x8x1x16xf32>
    tpu.vector_store %arg5[%c0_35, %c4_36, %c0_37, %c0_38], %52 {strides = array<i32>} : memref<1x12x8x16xf32, #tpu.memory_space<vmem>>, vector<1x8x1x16xf32>,
    %c1_i32_39 = arith.constant 1 : i32
    %53 = arith.addi %0, %c1_i32_39 : i32
    %c0_i32_40 = arith.constant 0 : i32
    %54 = arith.addi %53, %c0_i32_40 : i32
    %c0_41 = arith.constant 0 : index
    %c0_42 = arith.constant 0 : index
    %55 = arith.index_cast %54 : i32 to index
    %c0_43 = arith.constant 0 : index
    %56 = vector.load %arg4[%c0_41, %c0_42, %55, %c0_43] : memref<1x4x18x18xf32, #tpu.memory_space<vmem>>, vector<1x4x1x18xf32>
    %57 = vector.shape_cast %56 : vector<1x4x1x18xf32> to vector<4x18xf32>
    %58 = vector.extract_strided_slice %57 {offsets = [0, 0], sizes = [4, 16], strides = [1, 1]} : vector<4x18xf32> to vector<4x16xf32>
    %c0_44 = arith.constant 0 : index
    %c0_45 = arith.constant 0 : index
    %59 = vector.load %arg6[%c0_44, %c0_45] : memref<36x16xf32, #tpu.memory_space<vmem>>, vector<4x16xf32>
    tpu.vector_store %arg6[%c0_44, %c0_45], %58 {strides = array<i32>} : memref<36x16xf32, #tpu.memory_space<vmem>>, vector<4x16xf32>,
    %60 = vector.extract_strided_slice %57 {offsets = [0, 1], sizes = [4, 16], strides = [1, 1]} : vector<4x18xf32> to vector<4x16xf32>
    %c4_46 = arith.constant 4 : index
    %c0_47 = arith.constant 0 : index
    %61 = vector.load %arg6[%c4_46, %c0_47] : memref<36x16xf32, #tpu.memory_space<vmem>>, vector<4x16xf32>
    tpu.vector_store %arg6[%c4_46, %c0_47], %60 {strides = array<i32>} : memref<36x16xf32, #tpu.memory_space<vmem>>, vector<4x16xf32>,
    %62 = vector.extract_strided_slice %57 {offsets = [0, 2], sizes = [4, 16], strides = [1, 1]} : vector<4x18xf32> to vector<4x16xf32>
    %c8_48 = arith.constant 8 : index
    %c0_49 = arith.constant 0 : index
    %63 = vector.load %arg6[%c8_48, %c0_49] : memref<36x16xf32, #tpu.memory_space<vmem>>, vector<4x16xf32>
    tpu.vector_store %arg6[%c8_48, %c0_49], %62 {strides = array<i32>} : memref<36x16xf32, #tpu.memory_space<vmem>>, vector<4x16xf32>,
    %c1_i32_50 = arith.constant 1 : i32
    %64 = arith.addi %0, %c1_i32_50 : i32
    %c1_i32_51 = arith.constant 1 : i32
    %65 = arith.addi %64, %c1_i32_51 : i32
    %c0_52 = arith.constant 0 : index
    %c0_53 = arith.constant 0 : index
    %66 = arith.index_cast %65 : i32 to index
    %c0_54 = arith.constant 0 : index
    %67 = vector.load %arg4[%c0_52, %c0_53, %66, %c0_54] : memref<1x4x18x18xf32, #tpu.memory_space<vmem>>, vector<1x4x1x18xf32>
    %68 = vector.shape_cast %67 : vector<1x4x1x18xf32> to vector<4x18xf32>
    %69 = vector.extract_strided_slice %68 {offsets = [0, 0], sizes = [4, 16], strides = [1, 1]} : vector<4x18xf32> to vector<4x16xf32>
    %c12_55 = arith.constant 12 : index
    %c0_56 = arith.constant 0 : index
    %70 = vector.load %arg6[%c12_55, %c0_56] : memref<36x16xf32, #tpu.memory_space<vmem>>, vector<4x16xf32>
    tpu.vector_store %arg6[%c12_55, %c0_56], %69 {strides = array<i32>} : memref<36x16xf32, #tpu.memory_space<vmem>>, vector<4x16xf32>,
    %71 = vector.extract_strided_slice %68 {offsets = [0, 1], sizes = [4, 16], strides = [1, 1]} : vector<4x18xf32> to vector<4x16xf32>
    %c16_57 = arith.constant 16 : index
    %c0_58 = arith.constant 0 : index
    %72 = vector.load %arg6[%c16_57, %c0_58] : memref<36x16xf32, #tpu.memory_space<vmem>>, vector<4x16xf32>
    tpu.vector_store %arg6[%c16_57, %c0_58], %71 {strides = array<i32>} : memref<36x16xf32, #tpu.memory_space<vmem>>, vector<4x16xf32>,
    %73 = vector.extract_strided_slice %68 {offsets = [0, 2], sizes = [4, 16], strides = [1, 1]} : vector<4x18xf32> to vector<4x16xf32>
    %c20_59 = arith.constant 20 : index
    %c0_60 = arith.constant 0 : index
    %74 = vector.load %arg6[%c20_59, %c0_60] : memref<36x16xf32, #tpu.memory_space<vmem>>, vector<4x16xf32>
    tpu.vector_store %arg6[%c20_59, %c0_60], %73 {strides = array<i32>} : memref<36x16xf32, #tpu.memory_space<vmem>>, vector<4x16xf32>,
    %c1_i32_61 = arith.constant 1 : i32
    %75 = arith.addi %0, %c1_i32_61 : i32
    %c2_i32_62 = arith.constant 2 : i32
    %76 = arith.addi %75, %c2_i32_62 : i32
    %c0_63 = arith.constant 0 : index
    %c0_64 = arith.constant 0 : index
    %77 = arith.index_cast %76 : i32 to index
    %c0_65 = arith.constant 0 : index
    %78 = vector.load %arg4[%c0_63, %c0_64, %77, %c0_65] : memref<1x4x18x18xf32, #tpu.memory_space<vmem>>, vector<1x4x1x18xf32>
    %79 = vector.shape_cast %78 : vector<1x4x1x18xf32> to vector<4x18xf32>
    %80 = vector.extract_strided_slice %79 {offsets = [0, 0], sizes = [4, 16], strides = [1, 1]} : vector<4x18xf32> to vector<4x16xf32>
    %c24_66 = arith.constant 24 : index
    %c0_67 = arith.constant 0 : index
    %81 = vector.load %arg6[%c24_66, %c0_67] : memref<36x16xf32, #tpu.memory_space<vmem>>, vector<4x16xf32>
    tpu.vector_store %arg6[%c24_66, %c0_67], %80 {strides = array<i32>} : memref<36x16xf32, #tpu.memory_space<vmem>>, vector<4x16xf32>,
    %82 = vector.extract_strided_slice %79 {offsets = [0, 1], sizes = [4, 16], strides = [1, 1]} : vector<4x18xf32> to vector<4x16xf32>
    %c28_68 = arith.constant 28 : index
    %c0_69 = arith.constant 0 : index
    %83 = vector.load %arg6[%c28_68, %c0_69] : memref<36x16xf32, #tpu.memory_space<vmem>>, vector<4x16xf32>
    tpu.vector_store %arg6[%c28_68, %c0_69], %82 {strides = array<i32>} : memref<36x16xf32, #tpu.memory_space<vmem>>, vector<4x16xf32>,
    %84 = vector.extract_strided_slice %79 {offsets = [0, 2], sizes = [4, 16], strides = [1, 1]} : vector<4x18xf32> to vector<4x16xf32>
    %c32_70 = arith.constant 32 : index
    %c0_71 = arith.constant 0 : index
    %85 = vector.load %arg6[%c32_70, %c0_71] : memref<36x16xf32, #tpu.memory_space<vmem>>, vector<4x16xf32>
    tpu.vector_store %arg6[%c32_70, %c0_71], %84 {strides = array<i32>} : memref<36x16xf32, #tpu.memory_space<vmem>>, vector<4x16xf32>,
    %c0_72 = arith.constant 0 : index
    %c0_73 = arith.constant 0 : index
    %86 = vector.load %arg6[%c0_72, %c0_73] : memref<36x16xf32, #tpu.memory_space<vmem>>, vector<36x16xf32>
    %87 = arith.truncf %86 : vector<36x16xf32> to vector<36x16xbf16>
    %cst_74 = arith.constant dense<0.000000e+00> : vector<8x16xf32>
    %88 = tpu.matmul %8, %87, %cst_74 {dimension_numbers = #tpu.dot_dimension_numbers<[1], [0], [0], [1], [0, 0, 1, 1], [], []>} : vector<8x36xbf16>, vector<36x16xbf16>, vector<8x16xf32> -> vector<8x16xf32>
    %89 = vector.broadcast %9 : vector<8x1xf32> to vector<8x16xf32>
    %90 = arith.addf %88, %89 : vector<8x16xf32>
    %cst_75 = arith.constant 0.000000e+00 : f32
    %91 = vector.broadcast %cst_75 : f32 to vector<8x16xf32>
    %92 = arith.maximumf %90, %91 : vector<8x16xf32>
    %c0_76 = arith.constant 0 : index
    %c4_77 = arith.constant 4 : index
    %c1_78 = arith.constant 1 : index
    %c0_79 = arith.constant 0 : index
    %93 = vector.load %arg5[%c0_76, %c4_77, %c1_78, %c0_79] : memref<1x12x8x16xf32, #tpu.memory_space<vmem>>, vector<1x8x1x16xf32>
    %94 = vector.shape_cast %93 : vector<1x8x1x16xf32> to vector<8x16xf32>
    %95 = vector.shape_cast %92 : vector<8x16xf32> to vector<1x8x1x16xf32>
    tpu.vector_store %arg5[%c0_76, %c4_77, %c1_78, %c0_79], %95 {strides = array<i32>} : memref<1x12x8x16xf32, #tpu.memory_space<vmem>>, vector<1x8x1x16xf32>,
    %c2_i32_80 = arith.constant 2 : i32
    %96 = arith.addi %0, %c2_i32_80 : i32
    %c0_i32_81 = arith.constant 0 : i32
    %97 = arith.addi %96, %c0_i32_81 : i32
    %c0_82 = arith.constant 0 : index
    %c0_83 = arith.constant 0 : index
    %98 = arith.index_cast %97 : i32 to index
    %c0_84 = arith.constant 0 : index
    %99 = vector.load %arg4[%c0_82, %c0_83, %98, %c0_84] : memref<1x4x18x18xf32, #tpu.memory_space<vmem>>, vector<1x4x1x18xf32>
    %100 = vector.shape_cast %99 : vector<1x4x1x18xf32> to vector<4x18xf32>
    %101 = vector.extract_strided_slice %100 {offsets = [0, 0], sizes = [4, 16], strides = [1, 1]} : vector<4x18xf32> to vector<4x16xf32>
    %c0_85 = arith.constant 0 : index
    %c0_86 = arith.constant 0 : index
    %102 = vector.load %arg6[%c0_85, %c0_86] : memref<36x16xf32, #tpu.memory_space<vmem>>, vector<4x16xf32>
    tpu.vector_store %arg6[%c0_85, %c0_86], %101 {strides = array<i32>} : memref<36x16xf32, #tpu.memory_space<vmem>>, vector<4x16xf32>,
    %103 = vector.extract_strided_slice %100 {offsets = [0, 1], sizes = [4, 16], strides = [1, 1]} : vector<4x18xf32> to vector<4x16xf32>
    %c4_87 = arith.constant 4 : index
    %c0_88 = arith.constant 0 : index
    %104 = vector.load %arg6[%c4_87, %c0_88] : memref<36x16xf32, #tpu.memory_space<vmem>>, vector<4x16xf32>
    tpu.vector_store %arg6[%c4_87, %c0_88], %103 {strides = array<i32>} : memref<36x16xf32, #tpu.memory_space<vmem>>, vector<4x16xf32>,
    %105 = vector.extract_strided_slice %100 {offsets = [0, 2], sizes = [4, 16], strides = [1, 1]} : vector<4x18xf32> to vector<4x16xf32>
    %c8_89 = arith.constant 8 : index
    %c0_90 = arith.constant 0 : index
    %106 = vector.load %arg6[%c8_89, %c0_90] : memref<36x16xf32, #tpu.memory_space<vmem>>, vector<4x16xf32>
    tpu.vector_store %arg6[%c8_89, %c0_90], %105 {strides = array<i32>} : memref<36x16xf32, #tpu.memory_space<vmem>>, vector<4x16xf32>,
    %c2_i32_91 = arith.constant 2 : i32
    %107 = arith.addi %0, %c2_i32_91 : i32
    %c1_i32_92 = arith.constant 1 : i32
    %108 = arith.addi %107, %c1_i32_92 : i32
    %c0_93 = arith.constant 0 : index
    %c0_94 = arith.constant 0 : index
    %109 = arith.index_cast %108 : i32 to index
    %c0_95 = arith.constant 0 : index
    %110 = vector.load %arg4[%c0_93, %c0_94, %109, %c0_95] : memref<1x4x18x18xf32, #tpu.memory_space<vmem>>, vector<1x4x1x18xf32>
    %111 = vector.shape_cast %110 : vector<1x4x1x18xf32> to vector<4x18xf32>
    %112 = vector.extract_strided_slice %111 {offsets = [0, 0], sizes = [4, 16], strides = [1, 1]} : vector<4x18xf32> to vector<4x16xf32>
    %c12_96 = arith.constant 12 : index
    %c0_97 = arith.constant 0 : index
    %113 = vector.load %arg6[%c12_96, %c0_97] : memref<36x16xf32, #tpu.memory_space<vmem>>, vector<4x16xf32>
    tpu.vector_store %arg6[%c12_96, %c0_97], %112 {strides = array<i32>} : memref<36x16xf32, #tpu.memory_space<vmem>>, vector<4x16xf32>,
    %114 = vector.extract_strided_slice %111 {offsets = [0, 1], sizes = [4, 16], strides = [1, 1]} : vector<4x18xf32> to vector<4x16xf32>
    %c16_98 = arith.constant 16 : index
    %c0_99 = arith.constant 0 : index
    %115 = vector.load %arg6[%c16_98, %c0_99] : memref<36x16xf32, #tpu.memory_space<vmem>>, vector<4x16xf32>
    tpu.vector_store %arg6[%c16_98, %c0_99], %114 {strides = array<i32>} : memref<36x16xf32, #tpu.memory_space<vmem>>, vector<4x16xf32>,
    %116 = vector.extract_strided_slice %111 {offsets = [0, 2], sizes = [4, 16], strides = [1, 1]} : vector<4x18xf32> to vector<4x16xf32>
    %c20_100 = arith.constant 20 : index
    %c0_101 = arith.constant 0 : index
    %117 = vector.load %arg6[%c20_100, %c0_101] : memref<36x16xf32, #tpu.memory_space<vmem>>, vector<4x16xf32>
    tpu.vector_store %arg6[%c20_100, %c0_101], %116 {strides = array<i32>} : memref<36x16xf32, #tpu.memory_space<vmem>>, vector<4x16xf32>,
    %c2_i32_102 = arith.constant 2 : i32
    %118 = arith.addi %0, %c2_i32_102 : i32
    %c2_i32_103 = arith.constant 2 : i32
    %119 = arith.addi %118, %c2_i32_103 : i32
    %c0_104 = arith.constant 0 : index
    %c0_105 = arith.constant 0 : index
    %120 = arith.index_cast %119 : i32 to index
    %c0_106 = arith.constant 0 : index
    %121 = vector.load %arg4[%c0_104, %c0_105, %120, %c0_106] : memref<1x4x18x18xf32, #tpu.memory_space<vmem>>, vector<1x4x1x18xf32>
    %122 = vector.shape_cast %121 : vector<1x4x1x18xf32> to vector<4x18xf32>
    %123 = vector.extract_strided_slice %122 {offsets = [0, 0], sizes = [4, 16], strides = [1, 1]} : vector<4x18xf32> to vector<4x16xf32>
    %c24_107 = arith.constant 24 : index
    %c0_108 = arith.constant 0 : index
    %124 = vector.load %arg6[%c24_107, %c0_108] : memref<36x16xf32, #tpu.memory_space<vmem>>, vector<4x16xf32>
    tpu.vector_store %arg6[%c24_107, %c0_108], %123 {strides = array<i32>} : memref<36x16xf32, #tpu.memory_space<vmem>>, vector<4x16xf32>,
    %125 = vector.extract_strided_slice %122 {offsets = [0, 1], sizes = [4, 16], strides = [1, 1]} : vector<4x18xf32> to vector<4x16xf32>
    %c28_109 = arith.constant 28 : index
    %c0_110 = arith.constant 0 : index
    %126 = vector.load %arg6[%c28_109, %c0_110] : memref<36x16xf32, #tpu.memory_space<vmem>>, vector<4x16xf32>
    tpu.vector_store %arg6[%c28_109, %c0_110], %125 {strides = array<i32>} : memref<36x16xf32, #tpu.memory_space<vmem>>, vector<4x16xf32>,
    %127 = vector.extract_strided_slice %122 {offsets = [0, 2], sizes = [4, 16], strides = [1, 1]} : vector<4x18xf32> to vector<4x16xf32>
    %c32_111 = arith.constant 32 : index
    %c0_112 = arith.constant 0 : index
    %128 = vector.load %arg6[%c32_111, %c0_112] : memref<36x16xf32, #tpu.memory_space<vmem>>, vector<4x16xf32>
    tpu.vector_store %arg6[%c32_111, %c0_112], %127 {strides = array<i32>} : memref<36x16xf32, #tpu.memory_space<vmem>>, vector<4x16xf32>,
    %c0_113 = arith.constant 0 : index
    %c0_114 = arith.constant 0 : index
    %129 = vector.load %arg6[%c0_113, %c0_114] : memref<36x16xf32, #tpu.memory_space<vmem>>, vector<36x16xf32>
    %130 = arith.truncf %129 : vector<36x16xf32> to vector<36x16xbf16>
    %cst_115 = arith.constant dense<0.000000e+00> : vector<8x16xf32>
    %131 = tpu.matmul %8, %130, %cst_115 {dimension_numbers = #tpu.dot_dimension_numbers<[1], [0], [0], [1], [0, 0, 1, 1], [], []>} : vector<8x36xbf16>, vector<36x16xbf16>, vector<8x16xf32> -> vector<8x16xf32>
    %132 = vector.broadcast %9 : vector<8x1xf32> to vector<8x16xf32>
    %133 = arith.addf %131, %132 : vector<8x16xf32>
    %cst_116 = arith.constant 0.000000e+00 : f32
    %134 = vector.broadcast %cst_116 : f32 to vector<8x16xf32>
    %135 = arith.maximumf %133, %134 : vector<8x16xf32>
    %c0_117 = arith.constant 0 : index
    %c4_118 = arith.constant 4 : index
    %c2 = arith.constant 2 : index
    %c0_119 = arith.constant 0 : index
    %136 = vector.load %arg5[%c0_117, %c4_118, %c2, %c0_119] : memref<1x12x8x16xf32, #tpu.memory_space<vmem>>, vector<1x8x1x16xf32>
    %137 = vector.shape_cast %136 : vector<1x8x1x16xf32> to vector<8x16xf32>
    %138 = vector.shape_cast %135 : vector<8x16xf32> to vector<1x8x1x16xf32>
    tpu.vector_store %arg5[%c0_117, %c4_118, %c2, %c0_119], %138 {strides = array<i32>} : memref<1x12x8x16xf32, #tpu.memory_space<vmem>>, vector<1x8x1x16xf32>,
    %c3_i32 = arith.constant 3 : i32
    %139 = arith.addi %0, %c3_i32 : i32
    %c0_i32_120 = arith.constant 0 : i32
    %140 = arith.addi %139, %c0_i32_120 : i32
    %c0_121 = arith.constant 0 : index
    %c0_122 = arith.constant 0 : index
    %141 = arith.index_cast %140 : i32 to index
    %c0_123 = arith.constant 0 : index
    %142 = vector.load %arg4[%c0_121, %c0_122, %141, %c0_123] : memref<1x4x18x18xf32, #tpu.memory_space<vmem>>, vector<1x4x1x18xf32>
    %143 = vector.shape_cast %142 : vector<1x4x1x18xf32> to vector<4x18xf32>
    %144 = vector.extract_strided_slice %143 {offsets = [0, 0], sizes = [4, 16], strides = [1, 1]} : vector<4x18xf32> to vector<4x16xf32>
    %c0_124 = arith.constant 0 : index
    %c0_125 = arith.constant 0 : index
    %145 = vector.load %arg6[%c0_124, %c0_125] : memref<36x16xf32, #tpu.memory_space<vmem>>, vector<4x16xf32>
    tpu.vector_store %arg6[%c0_124, %c0_125], %144 {strides = array<i32>} : memref<36x16xf32, #tpu.memory_space<vmem>>, vector<4x16xf32>,
    %146 = vector.extract_strided_slice %143 {offsets = [0, 1], sizes = [4, 16], strides = [1, 1]} : vector<4x18xf32> to vector<4x16xf32>
    %c4_126 = arith.constant 4 : index
    %c0_127 = arith.constant 0 : index
    %147 = vector.load %arg6[%c4_126, %c0_127] : memref<36x16xf32, #tpu.memory_space<vmem>>, vector<4x16xf32>
    tpu.vector_store %arg6[%c4_126, %c0_127], %146 {strides = array<i32>} : memref<36x16xf32, #tpu.memory_space<vmem>>, vector<4x16xf32>,
    %148 = vector.extract_strided_slice %143 {offsets = [0, 2], sizes = [4, 16], strides = [1, 1]} : vector<4x18xf32> to vector<4x16xf32>
    %c8_128 = arith.constant 8 : index
    %c0_129 = arith.constant 0 : index
    %149 = vector.load %arg6[%c8_128, %c0_129] : memref<36x16xf32, #tpu.memory_space<vmem>>, vector<4x16xf32>
    tpu.vector_store %arg6[%c8_128, %c0_129], %148 {strides = array<i32>} : memref<36x16xf32, #tpu.memory_space<vmem>>, vector<4x16xf32>,
    %c3_i32_130 = arith.constant 3 : i32
    %150 = arith.addi %0, %c3_i32_130 : i32
    %c1_i32_131 = arith.constant 1 : i32
    %151 = arith.addi %150, %c1_i32_131 : i32
    %c0_132 = arith.constant 0 : index
    %c0_133 = arith.constant 0 : index
    %152 = arith.index_cast %151 : i32 to index
    %c0_134 = arith.constant 0 : index
    %153 = vector.load %arg4[%c0_132, %c0_133, %152, %c0_134] : memref<1x4x18x18xf32, #tpu.memory_space<vmem>>, vector<1x4x1x18xf32>
    %154 = vector.shape_cast %153 : vector<1x4x1x18xf32> to vector<4x18xf32>
    %155 = vector.extract_strided_slice %154 {offsets = [0, 0], sizes = [4, 16], strides = [1, 1]} : vector<4x18xf32> to vector<4x16xf32>
    %c12_135 = arith.constant 12 : index
    %c0_136 = arith.constant 0 : index
    %156 = vector.load %arg6[%c12_135, %c0_136] : memref<36x16xf32, #tpu.memory_space<vmem>>, vector<4x16xf32>
    tpu.vector_store %arg6[%c12_135, %c0_136], %155 {strides = array<i32>} : memref<36x16xf32, #tpu.memory_space<vmem>>, vector<4x16xf32>,
    %157 = vector.extract_strided_slice %154 {offsets = [0, 1], sizes = [4, 16], strides = [1, 1]} : vector<4x18xf32> to vector<4x16xf32>
    %c16_137 = arith.constant 16 : index
    %c0_138 = arith.constant 0 : index
    %158 = vector.load %arg6[%c16_137, %c0_138] : memref<36x16xf32, #tpu.memory_space<vmem>>, vector<4x16xf32>
    tpu.vector_store %arg6[%c16_137, %c0_138], %157 {strides = array<i32>} : memref<36x16xf32, #tpu.memory_space<vmem>>, vector<4x16xf32>,
    %159 = vector.extract_strided_slice %154 {offsets = [0, 2], sizes = [4, 16], strides = [1, 1]} : vector<4x18xf32> to vector<4x16xf32>
    %c20_139 = arith.constant 20 : index
    %c0_140 = arith.constant 0 : index
    %160 = vector.load %arg6[%c20_139, %c0_140] : memref<36x16xf32, #tpu.memory_space<vmem>>, vector<4x16xf32>
    tpu.vector_store %arg6[%c20_139, %c0_140], %159 {strides = array<i32>} : memref<36x16xf32, #tpu.memory_space<vmem>>, vector<4x16xf32>,
    %c3_i32_141 = arith.constant 3 : i32
    %161 = arith.addi %0, %c3_i32_141 : i32
    %c2_i32_142 = arith.constant 2 : i32
    %162 = arith.addi %161, %c2_i32_142 : i32
    %c0_143 = arith.constant 0 : index
    %c0_144 = arith.constant 0 : index
    %163 = arith.index_cast %162 : i32 to index
    %c0_145 = arith.constant 0 : index
    %164 = vector.load %arg4[%c0_143, %c0_144, %163, %c0_145] : memref<1x4x18x18xf32, #tpu.memory_space<vmem>>, vector<1x4x1x18xf32>
    %165 = vector.shape_cast %164 : vector<1x4x1x18xf32> to vector<4x18xf32>
    %166 = vector.extract_strided_slice %165 {offsets = [0, 0], sizes = [4, 16], strides = [1, 1]} : vector<4x18xf32> to vector<4x16xf32>
    %c24_146 = arith.constant 24 : index
    %c0_147 = arith.constant 0 : index
    %167 = vector.load %arg6[%c24_146, %c0_147] : memref<36x16xf32, #tpu.memory_space<vmem>>, vector<4x16xf32>
    tpu.vector_store %arg6[%c24_146, %c0_147], %166 {strides = array<i32>} : memref<36x16xf32, #tpu.memory_space<vmem>>, vector<4x16xf32>,
    %168 = vector.extract_strided_slice %165 {offsets = [0, 1], sizes = [4, 16], strides = [1, 1]} : vector<4x18xf32> to vector<4x16xf32>
    %c28_148 = arith.constant 28 : index
    %c0_149 = arith.constant 0 : index
    %169 = vector.load %arg6[%c28_148, %c0_149] : memref<36x16xf32, #tpu.memory_space<vmem>>, vector<4x16xf32>
    tpu.vector_store %arg6[%c28_148, %c0_149], %168 {strides = array<i32>} : memref<36x16xf32, #tpu.memory_space<vmem>>, vector<4x16xf32>,
    %170 = vector.extract_strided_slice %165 {offsets = [0, 2], sizes = [4, 16], strides = [1, 1]} : vector<4x18xf32> to vector<4x16xf32>
    %c32_150 = arith.constant 32 : index
    %c0_151 = arith.constant 0 : index
    %171 = vector.load %arg6[%c32_150, %c0_151] : memref<36x16xf32, #tpu.memory_space<vmem>>, vector<4x16xf32>
    tpu.vector_store %arg6[%c32_150, %c0_151], %170 {strides = array<i32>} : memref<36x16xf32, #tpu.memory_space<vmem>>, vector<4x16xf32>,
    %c0_152 = arith.constant 0 : index
    %c0_153 = arith.constant 0 : index
    %172 = vector.load %arg6[%c0_152, %c0_153] : memref<36x16xf32, #tpu.memory_space<vmem>>, vector<36x16xf32>
    %173 = arith.truncf %172 : vector<36x16xf32> to vector<36x16xbf16>
    %cst_154 = arith.constant dense<0.000000e+00> : vector<8x16xf32>
    %174 = tpu.matmul %8, %173, %cst_154 {dimension_numbers = #tpu.dot_dimension_numbers<[1], [0], [0], [1], [0, 0, 1, 1], [], []>} : vector<8x36xbf16>, vector<36x16xbf16>, vector<8x16xf32> -> vector<8x16xf32>
    %175 = vector.broadcast %9 : vector<8x1xf32> to vector<8x16xf32>
    %176 = arith.addf %174, %175 : vector<8x16xf32>
    %cst_155 = arith.constant 0.000000e+00 : f32
    %177 = vector.broadcast %cst_155 : f32 to vector<8x16xf32>
    %178 = arith.maximumf %176, %177 : vector<8x16xf32>
    %c0_156 = arith.constant 0 : index
    %c4_157 = arith.constant 4 : index
    %c3 = arith.constant 3 : index
    %c0_158 = arith.constant 0 : index
    %179 = vector.load %arg5[%c0_156, %c4_157, %c3, %c0_158] : memref<1x12x8x16xf32, #tpu.memory_space<vmem>>, vector<1x8x1x16xf32>
    %180 = vector.shape_cast %179 : vector<1x8x1x16xf32> to vector<8x16xf32>
    %181 = vector.shape_cast %178 : vector<8x16xf32> to vector<1x8x1x16xf32>
    tpu.vector_store %arg5[%c0_156, %c4_157, %c3, %c0_158], %181 {strides = array<i32>} : memref<1x12x8x16xf32, #tpu.memory_space<vmem>>, vector<1x8x1x16xf32>,
    %c4_i32 = arith.constant 4 : i32
    %182 = arith.addi %0, %c4_i32 : i32
    %c0_i32_159 = arith.constant 0 : i32
    %183 = arith.addi %182, %c0_i32_159 : i32
    %c0_160 = arith.constant 0 : index
    %c0_161 = arith.constant 0 : index
    %184 = arith.index_cast %183 : i32 to index
    %c0_162 = arith.constant 0 : index
    %185 = vector.load %arg4[%c0_160, %c0_161, %184, %c0_162] : memref<1x4x18x18xf32, #tpu.memory_space<vmem>>, vector<1x4x1x18xf32>
    %186 = vector.shape_cast %185 : vector<1x4x1x18xf32> to vector<4x18xf32>
    %187 = vector.extract_strided_slice %186 {offsets = [0, 0], sizes = [4, 16], strides = [1, 1]} : vector<4x18xf32> to vector<4x16xf32>
    %c0_163 = arith.constant 0 : index
    %c0_164 = arith.constant 0 : index
    %188 = vector.load %arg6[%c0_163, %c0_164] : memref<36x16xf32, #tpu.memory_space<vmem>>, vector<4x16xf32>
    tpu.vector_store %arg6[%c0_163, %c0_164], %187 {strides = array<i32>} : memref<36x16xf32, #tpu.memory_space<vmem>>, vector<4x16xf32>,
    %189 = vector.extract_strided_slice %186 {offsets = [0, 1], sizes = [4, 16], strides = [1, 1]} : vector<4x18xf32> to vector<4x16xf32>
    %c4_165 = arith.constant 4 : index
    %c0_166 = arith.constant 0 : index
    %190 = vector.load %arg6[%c4_165, %c0_166] : memref<36x16xf32, #tpu.memory_space<vmem>>, vector<4x16xf32>
    tpu.vector_store %arg6[%c4_165, %c0_166], %189 {strides = array<i32>} : memref<36x16xf32, #tpu.memory_space<vmem>>, vector<4x16xf32>,
    %191 = vector.extract_strided_slice %186 {offsets = [0, 2], sizes = [4, 16], strides = [1, 1]} : vector<4x18xf32> to vector<4x16xf32>
    %c8_167 = arith.constant 8 : index
    %c0_168 = arith.constant 0 : index
    %192 = vector.load %arg6[%c8_167, %c0_168] : memref<36x16xf32, #tpu.memory_space<vmem>>, vector<4x16xf32>
    tpu.vector_store %arg6[%c8_167, %c0_168], %191 {strides = array<i32>} : memref<36x16xf32, #tpu.memory_space<vmem>>, vector<4x16xf32>,
    %c4_i32_169 = arith.constant 4 : i32
    %193 = arith.addi %0, %c4_i32_169 : i32
    %c1_i32_170 = arith.constant 1 : i32
    %194 = arith.addi %193, %c1_i32_170 : i32
    %c0_171 = arith.constant 0 : index
    %c0_172 = arith.constant 0 : index
    %195 = arith.index_cast %194 : i32 to index
    %c0_173 = arith.constant 0 : index
    %196 = vector.load %arg4[%c0_171, %c0_172, %195, %c0_173] : memref<1x4x18x18xf32, #tpu.memory_space<vmem>>, vector<1x4x1x18xf32>
    %197 = vector.shape_cast %196 : vector<1x4x1x18xf32> to vector<4x18xf32>
    %198 = vector.extract_strided_slice %197 {offsets = [0, 0], sizes = [4, 16], strides = [1, 1]} : vector<4x18xf32> to vector<4x16xf32>
    %c12_174 = arith.constant 12 : index
    %c0_175 = arith.constant 0 : index
    %199 = vector.load %arg6[%c12_174, %c0_175] : memref<36x16xf32, #tpu.memory_space<vmem>>, vector<4x16xf32>
    tpu.vector_store %arg6[%c12_174, %c0_175], %198 {strides = array<i32>} : memref<36x16xf32, #tpu.memory_space<vmem>>, vector<4x16xf32>,
    %200 = vector.extract_strided_slice %197 {offsets = [0, 1], sizes = [4, 16], strides = [1, 1]} : vector<4x18xf32> to vector<4x16xf32>
    %c16_176 = arith.constant 16 : index
    %c0_177 = arith.constant 0 : index
    %201 = vector.load %arg6[%c16_176, %c0_177] : memref<36x16xf32, #tpu.memory_space<vmem>>, vector<4x16xf32>
    tpu.vector_store %arg6[%c16_176, %c0_177], %200 {strides = array<i32>} : memref<36x16xf32, #tpu.memory_space<vmem>>, vector<4x16xf32>,
    %202 = vector.extract_strided_slice %197 {offsets = [0, 2], sizes = [4, 16], strides = [1, 1]} : vector<4x18xf32> to vector<4x16xf32>
    %c20_178 = arith.constant 20 : index
    %c0_179 = arith.constant 0 : index
    %203 = vector.load %arg6[%c20_178, %c0_179] : memref<36x16xf32, #tpu.memory_space<vmem>>, vector<4x16xf32>
    tpu.vector_store %arg6[%c20_178, %c0_179], %202 {strides = array<i32>} : memref<36x16xf32, #tpu.memory_space<vmem>>, vector<4x16xf32>,
    %c4_i32_180 = arith.constant 4 : i32
    %204 = arith.addi %0, %c4_i32_180 : i32
    %c2_i32_181 = arith.constant 2 : i32
    %205 = arith.addi %204, %c2_i32_181 : i32
    %c0_182 = arith.constant 0 : index
    %c0_183 = arith.constant 0 : index
    %206 = arith.index_cast %205 : i32 to index
    %c0_184 = arith.constant 0 : index
    %207 = vector.load %arg4[%c0_182, %c0_183, %206, %c0_184] : memref<1x4x18x18xf32, #tpu.memory_space<vmem>>, vector<1x4x1x18xf32>
    %208 = vector.shape_cast %207 : vector<1x4x1x18xf32> to vector<4x18xf32>
    %209 = vector.extract_strided_slice %208 {offsets = [0, 0], sizes = [4, 16], strides = [1, 1]} : vector<4x18xf32> to vector<4x16xf32>
    %c24_185 = arith.constant 24 : index
    %c0_186 = arith.constant 0 : index
    %210 = vector.load %arg6[%c24_185, %c0_186] : memref<36x16xf32, #tpu.memory_space<vmem>>, vector<4x16xf32>
    tpu.vector_store %arg6[%c24_185, %c0_186], %209 {strides = array<i32>} : memref<36x16xf32, #tpu.memory_space<vmem>>, vector<4x16xf32>,
    %211 = vector.extract_strided_slice %208 {offsets = [0, 1], sizes = [4, 16], strides = [1, 1]} : vector<4x18xf32> to vector<4x16xf32>
    %c28_187 = arith.constant 28 : index
    %c0_188 = arith.constant 0 : index
    %212 = vector.load %arg6[%c28_187, %c0_188] : memref<36x16xf32, #tpu.memory_space<vmem>>, vector<4x16xf32>
    tpu.vector_store %arg6[%c28_187, %c0_188], %211 {strides = array<i32>} : memref<36x16xf32, #tpu.memory_space<vmem>>, vector<4x16xf32>,
    %213 = vector.extract_strided_slice %208 {offsets = [0, 2], sizes = [4, 16], strides = [1, 1]} : vector<4x18xf32> to vector<4x16xf32>
    %c32_189 = arith.constant 32 : index
    %c0_190 = arith.constant 0 : index
    %214 = vector.load %arg6[%c32_189, %c0_190] : memref<36x16xf32, #tpu.memory_space<vmem>>, vector<4x16xf32>
    tpu.vector_store %arg6[%c32_189, %c0_190], %213 {strides = array<i32>} : memref<36x16xf32, #tpu.memory_space<vmem>>, vector<4x16xf32>,
    %c0_191 = arith.constant 0 : index
    %c0_192 = arith.constant 0 : index
    %215 = vector.load %arg6[%c0_191, %c0_192] : memref<36x16xf32, #tpu.memory_space<vmem>>, vector<36x16xf32>
    %216 = arith.truncf %215 : vector<36x16xf32> to vector<36x16xbf16>
    %cst_193 = arith.constant dense<0.000000e+00> : vector<8x16xf32>
    %217 = tpu.matmul %8, %216, %cst_193 {dimension_numbers = #tpu.dot_dimension_numbers<[1], [0], [0], [1], [0, 0, 1, 1], [], []>} : vector<8x36xbf16>, vector<36x16xbf16>, vector<8x16xf32> -> vector<8x16xf32>
    %218 = vector.broadcast %9 : vector<8x1xf32> to vector<8x16xf32>
    %219 = arith.addf %217, %218 : vector<8x16xf32>
    %cst_194 = arith.constant 0.000000e+00 : f32
    %220 = vector.broadcast %cst_194 : f32 to vector<8x16xf32>
    %221 = arith.maximumf %219, %220 : vector<8x16xf32>
    %c0_195 = arith.constant 0 : index
    %c4_196 = arith.constant 4 : index
    %c4_197 = arith.constant 4 : index
    %c0_198 = arith.constant 0 : index
    %222 = vector.load %arg5[%c0_195, %c4_196, %c4_197, %c0_198] : memref<1x12x8x16xf32, #tpu.memory_space<vmem>>, vector<1x8x1x16xf32>
    %223 = vector.shape_cast %222 : vector<1x8x1x16xf32> to vector<8x16xf32>
    %224 = vector.shape_cast %221 : vector<8x16xf32> to vector<1x8x1x16xf32>
    tpu.vector_store %arg5[%c0_195, %c4_196, %c4_197, %c0_198], %224 {strides = array<i32>} : memref<1x12x8x16xf32, #tpu.memory_space<vmem>>, vector<1x8x1x16xf32>,
    %c5_i32 = arith.constant 5 : i32
    %225 = arith.addi %0, %c5_i32 : i32
    %c0_i32_199 = arith.constant 0 : i32
    %226 = arith.addi %225, %c0_i32_199 : i32
    %c0_200 = arith.constant 0 : index
    %c0_201 = arith.constant 0 : index
    %227 = arith.index_cast %226 : i32 to index
    %c0_202 = arith.constant 0 : index
    %228 = vector.load %arg4[%c0_200, %c0_201, %227, %c0_202] : memref<1x4x18x18xf32, #tpu.memory_space<vmem>>, vector<1x4x1x18xf32>
    %229 = vector.shape_cast %228 : vector<1x4x1x18xf32> to vector<4x18xf32>
    %230 = vector.extract_strided_slice %229 {offsets = [0, 0], sizes = [4, 16], strides = [1, 1]} : vector<4x18xf32> to vector<4x16xf32>
    %c0_203 = arith.constant 0 : index
    %c0_204 = arith.constant 0 : index
    %231 = vector.load %arg6[%c0_203, %c0_204] : memref<36x16xf32, #tpu.memory_space<vmem>>, vector<4x16xf32>
    tpu.vector_store %arg6[%c0_203, %c0_204], %230 {strides = array<i32>} : memref<36x16xf32, #tpu.memory_space<vmem>>, vector<4x16xf32>,
    %232 = vector.extract_strided_slice %229 {offsets = [0, 1], sizes = [4, 16], strides = [1, 1]} : vector<4x18xf32> to vector<4x16xf32>
    %c4_205 = arith.constant 4 : index
    %c0_206 = arith.constant 0 : index
    %233 = vector.load %arg6[%c4_205, %c0_206] : memref<36x16xf32, #tpu.memory_space<vmem>>, vector<4x16xf32>
    tpu.vector_store %arg6[%c4_205, %c0_206], %232 {strides = array<i32>} : memref<36x16xf32, #tpu.memory_space<vmem>>, vector<4x16xf32>,
    %234 = vector.extract_strided_slice %229 {offsets = [0, 2], sizes = [4, 16], strides = [1, 1]} : vector<4x18xf32> to vector<4x16xf32>
    %c8_207 = arith.constant 8 : index
    %c0_208 = arith.constant 0 : index
    %235 = vector.load %arg6[%c8_207, %c0_208] : memref<36x16xf32, #tpu.memory_space<vmem>>, vector<4x16xf32>
    tpu.vector_store %arg6[%c8_207, %c0_208], %234 {strides = array<i32>} : memref<36x16xf32, #tpu.memory_space<vmem>>, vector<4x16xf32>,
    %c5_i32_209 = arith.constant 5 : i32
    %236 = arith.addi %0, %c5_i32_209 : i32
    %c1_i32_210 = arith.constant 1 : i32
    %237 = arith.addi %236, %c1_i32_210 : i32
    %c0_211 = arith.constant 0 : index
    %c0_212 = arith.constant 0 : index
    %238 = arith.index_cast %237 : i32 to index
    %c0_213 = arith.constant 0 : index
    %239 = vector.load %arg4[%c0_211, %c0_212, %238, %c0_213] : memref<1x4x18x18xf32, #tpu.memory_space<vmem>>, vector<1x4x1x18xf32>
    %240 = vector.shape_cast %239 : vector<1x4x1x18xf32> to vector<4x18xf32>
    %241 = vector.extract_strided_slice %240 {offsets = [0, 0], sizes = [4, 16], strides = [1, 1]} : vector<4x18xf32> to vector<4x16xf32>
    %c12_214 = arith.constant 12 : index
    %c0_215 = arith.constant 0 : index
    %242 = vector.load %arg6[%c12_214, %c0_215] : memref<36x16xf32, #tpu.memory_space<vmem>>, vector<4x16xf32>
    tpu.vector_store %arg6[%c12_214, %c0_215], %241 {strides = array<i32>} : memref<36x16xf32, #tpu.memory_space<vmem>>, vector<4x16xf32>,
    %243 = vector.extract_strided_slice %240 {offsets = [0, 1], sizes = [4, 16], strides = [1, 1]} : vector<4x18xf32> to vector<4x16xf32>
    %c16_216 = arith.constant 16 : index
    %c0_217 = arith.constant 0 : index
    %244 = vector.load %arg6[%c16_216, %c0_217] : memref<36x16xf32, #tpu.memory_space<vmem>>, vector<4x16xf32>
    tpu.vector_store %arg6[%c16_216, %c0_217], %243 {strides = array<i32>} : memref<36x16xf32, #tpu.memory_space<vmem>>, vector<4x16xf32>,
    %245 = vector.extract_strided_slice %240 {offsets = [0, 2], sizes = [4, 16], strides = [1, 1]} : vector<4x18xf32> to vector<4x16xf32>
    %c20_218 = arith.constant 20 : index
    %c0_219 = arith.constant 0 : index
    %246 = vector.load %arg6[%c20_218, %c0_219] : memref<36x16xf32, #tpu.memory_space<vmem>>, vector<4x16xf32>
    tpu.vector_store %arg6[%c20_218, %c0_219], %245 {strides = array<i32>} : memref<36x16xf32, #tpu.memory_space<vmem>>, vector<4x16xf32>,
    %c5_i32_220 = arith.constant 5 : i32
    %247 = arith.addi %0, %c5_i32_220 : i32
    %c2_i32_221 = arith.constant 2 : i32
    %248 = arith.addi %247, %c2_i32_221 : i32
    %c0_222 = arith.constant 0 : index
    %c0_223 = arith.constant 0 : index
    %249 = arith.index_cast %248 : i32 to index
    %c0_224 = arith.constant 0 : index
    %250 = vector.load %arg4[%c0_222, %c0_223, %249, %c0_224] : memref<1x4x18x18xf32, #tpu.memory_space<vmem>>, vector<1x4x1x18xf32>
    %251 = vector.shape_cast %250 : vector<1x4x1x18xf32> to vector<4x18xf32>
    %252 = vector.extract_strided_slice %251 {offsets = [0, 0], sizes = [4, 16], strides = [1, 1]} : vector<4x18xf32> to vector<4x16xf32>
    %c24_225 = arith.constant 24 : index
    %c0_226 = arith.constant 0 : index
    %253 = vector.load %arg6[%c24_225, %c0_226] : memref<36x16xf32, #tpu.memory_space<vmem>>, vector<4x16xf32>
    tpu.vector_store %arg6[%c24_225, %c0_226], %252 {strides = array<i32>} : memref<36x16xf32, #tpu.memory_space<vmem>>, vector<4x16xf32>,
    %254 = vector.extract_strided_slice %251 {offsets = [0, 1], sizes = [4, 16], strides = [1, 1]} : vector<4x18xf32> to vector<4x16xf32>
    %c28_227 = arith.constant 28 : index
    %c0_228 = arith.constant 0 : index
    %255 = vector.load %arg6[%c28_227, %c0_228] : memref<36x16xf32, #tpu.memory_space<vmem>>, vector<4x16xf32>
    tpu.vector_store %arg6[%c28_227, %c0_228], %254 {strides = array<i32>} : memref<36x16xf32, #tpu.memory_space<vmem>>, vector<4x16xf32>,
    %256 = vector.extract_strided_slice %251 {offsets = [0, 2], sizes = [4, 16], strides = [1, 1]} : vector<4x18xf32> to vector<4x16xf32>
    %c32_229 = arith.constant 32 : index
    %c0_230 = arith.constant 0 : index
    %257 = vector.load %arg6[%c32_229, %c0_230] : memref<36x16xf32, #tpu.memory_space<vmem>>, vector<4x16xf32>
    tpu.vector_store %arg6[%c32_229, %c0_230], %256 {strides = array<i32>} : memref<36x16xf32, #tpu.memory_space<vmem>>, vector<4x16xf32>,
    %c0_231 = arith.constant 0 : index
    %c0_232 = arith.constant 0 : index
    %258 = vector.load %arg6[%c0_231, %c0_232] : memref<36x16xf32, #tpu.memory_space<vmem>>, vector<36x16xf32>
    %259 = arith.truncf %258 : vector<36x16xf32> to vector<36x16xbf16>
    %cst_233 = arith.constant dense<0.000000e+00> : vector<8x16xf32>
    %260 = tpu.matmul %8, %259, %cst_233 {dimension_numbers = #tpu.dot_dimension_numbers<[1], [0], [0], [1], [0, 0, 1, 1], [], []>} : vector<8x36xbf16>, vector<36x16xbf16>, vector<8x16xf32> -> vector<8x16xf32>
    %261 = vector.broadcast %9 : vector<8x1xf32> to vector<8x16xf32>
    %262 = arith.addf %260, %261 : vector<8x16xf32>
    %cst_234 = arith.constant 0.000000e+00 : f32
    %263 = vector.broadcast %cst_234 : f32 to vector<8x16xf32>
    %264 = arith.maximumf %262, %263 : vector<8x16xf32>
    %c0_235 = arith.constant 0 : index
    %c4_236 = arith.constant 4 : index
    %c5 = arith.constant 5 : index
    %c0_237 = arith.constant 0 : index
    %265 = vector.load %arg5[%c0_235, %c4_236, %c5, %c0_237] : memref<1x12x8x16xf32, #tpu.memory_space<vmem>>, vector<1x8x1x16xf32>
    %266 = vector.shape_cast %265 : vector<1x8x1x16xf32> to vector<8x16xf32>
    %267 = vector.shape_cast %264 : vector<8x16xf32> to vector<1x8x1x16xf32>
    tpu.vector_store %arg5[%c0_235, %c4_236, %c5, %c0_237], %267 {strides = array<i32>} : memref<1x12x8x16xf32, #tpu.memory_space<vmem>>, vector<1x8x1x16xf32>,
    %c6_i32 = arith.constant 6 : i32
    %268 = arith.addi %0, %c6_i32 : i32
    %c0_i32_238 = arith.constant 0 : i32
    %269 = arith.addi %268, %c0_i32_238 : i32
    %c0_239 = arith.constant 0 : index
    %c0_240 = arith.constant 0 : index
    %270 = arith.index_cast %269 : i32 to index
    %c0_241 = arith.constant 0 : index
    %271 = vector.load %arg4[%c0_239, %c0_240, %270, %c0_241] : memref<1x4x18x18xf32, #tpu.memory_space<vmem>>, vector<1x4x1x18xf32>
    %272 = vector.shape_cast %271 : vector<1x4x1x18xf32> to vector<4x18xf32>
    %273 = vector.extract_strided_slice %272 {offsets = [0, 0], sizes = [4, 16], strides = [1, 1]} : vector<4x18xf32> to vector<4x16xf32>
    %c0_242 = arith.constant 0 : index
    %c0_243 = arith.constant 0 : index
    %274 = vector.load %arg6[%c0_242, %c0_243] : memref<36x16xf32, #tpu.memory_space<vmem>>, vector<4x16xf32>
    tpu.vector_store %arg6[%c0_242, %c0_243], %273 {strides = array<i32>} : memref<36x16xf32, #tpu.memory_space<vmem>>, vector<4x16xf32>,
    %275 = vector.extract_strided_slice %272 {offsets = [0, 1], sizes = [4, 16], strides = [1, 1]} : vector<4x18xf32> to vector<4x16xf32>
    %c4_244 = arith.constant 4 : index
    %c0_245 = arith.constant 0 : index
    %276 = vector.load %arg6[%c4_244, %c0_245] : memref<36x16xf32, #tpu.memory_space<vmem>>, vector<4x16xf32>
    tpu.vector_store %arg6[%c4_244, %c0_245], %275 {strides = array<i32>} : memref<36x16xf32, #tpu.memory_space<vmem>>, vector<4x16xf32>,
    %277 = vector.extract_strided_slice %272 {offsets = [0, 2], sizes = [4, 16], strides = [1, 1]} : vector<4x18xf32> to vector<4x16xf32>
    %c8_246 = arith.constant 8 : index
    %c0_247 = arith.constant 0 : index
    %278 = vector.load %arg6[%c8_246, %c0_247] : memref<36x16xf32, #tpu.memory_space<vmem>>, vector<4x16xf32>
    tpu.vector_store %arg6[%c8_246, %c0_247], %277 {strides = array<i32>} : memref<36x16xf32, #tpu.memory_space<vmem>>, vector<4x16xf32>,
    %c6_i32_248 = arith.constant 6 : i32
    %279 = arith.addi %0, %c6_i32_248 : i32
    %c1_i32_249 = arith.constant 1 : i32
    %280 = arith.addi %279, %c1_i32_249 : i32
    %c0_250 = arith.constant 0 : index
    %c0_251 = arith.constant 0 : index
    %281 = arith.index_cast %280 : i32 to index
    %c0_252 = arith.constant 0 : index
    %282 = vector.load %arg4[%c0_250, %c0_251, %281, %c0_252] : memref<1x4x18x18xf32, #tpu.memory_space<vmem>>, vector<1x4x1x18xf32>
    %283 = vector.shape_cast %282 : vector<1x4x1x18xf32> to vector<4x18xf32>
    %284 = vector.extract_strided_slice %283 {offsets = [0, 0], sizes = [4, 16], strides = [1, 1]} : vector<4x18xf32> to vector<4x16xf32>
    %c12_253 = arith.constant 12 : index
    %c0_254 = arith.constant 0 : index
    %285 = vector.load %arg6[%c12_253, %c0_254] : memref<36x16xf32, #tpu.memory_space<vmem>>, vector<4x16xf32>
    tpu.vector_store %arg6[%c12_253, %c0_254], %284 {strides = array<i32>} : memref<36x16xf32, #tpu.memory_space<vmem>>, vector<4x16xf32>,
    %286 = vector.extract_strided_slice %283 {offsets = [0, 1], sizes = [4, 16], strides = [1, 1]} : vector<4x18xf32> to vector<4x16xf32>
    %c16_255 = arith.constant 16 : index
    %c0_256 = arith.constant 0 : index
    %287 = vector.load %arg6[%c16_255, %c0_256] : memref<36x16xf32, #tpu.memory_space<vmem>>, vector<4x16xf32>
    tpu.vector_store %arg6[%c16_255, %c0_256], %286 {strides = array<i32>} : memref<36x16xf32, #tpu.memory_space<vmem>>, vector<4x16xf32>,
    %288 = vector.extract_strided_slice %283 {offsets = [0, 2], sizes = [4, 16], strides = [1, 1]} : vector<4x18xf32> to vector<4x16xf32>
    %c20_257 = arith.constant 20 : index
    %c0_258 = arith.constant 0 : index
    %289 = vector.load %arg6[%c20_257, %c0_258] : memref<36x16xf32, #tpu.memory_space<vmem>>, vector<4x16xf32>
    tpu.vector_store %arg6[%c20_257, %c0_258], %288 {strides = array<i32>} : memref<36x16xf32, #tpu.memory_space<vmem>>, vector<4x16xf32>,
    %c6_i32_259 = arith.constant 6 : i32
    %290 = arith.addi %0, %c6_i32_259 : i32
    %c2_i32_260 = arith.constant 2 : i32
    %291 = arith.addi %290, %c2_i32_260 : i32
    %c0_261 = arith.constant 0 : index
    %c0_262 = arith.constant 0 : index
    %292 = arith.index_cast %291 : i32 to index
    %c0_263 = arith.constant 0 : index
    %293 = vector.load %arg4[%c0_261, %c0_262, %292, %c0_263] : memref<1x4x18x18xf32, #tpu.memory_space<vmem>>, vector<1x4x1x18xf32>
    %294 = vector.shape_cast %293 : vector<1x4x1x18xf32> to vector<4x18xf32>
    %295 = vector.extract_strided_slice %294 {offsets = [0, 0], sizes = [4, 16], strides = [1, 1]} : vector<4x18xf32> to vector<4x16xf32>
    %c24_264 = arith.constant 24 : index
    %c0_265 = arith.constant 0 : index
    %296 = vector.load %arg6[%c24_264, %c0_265] : memref<36x16xf32, #tpu.memory_space<vmem>>, vector<4x16xf32>
    tpu.vector_store %arg6[%c24_264, %c0_265], %295 {strides = array<i32>} : memref<36x16xf32, #tpu.memory_space<vmem>>, vector<4x16xf32>,
    %297 = vector.extract_strided_slice %294 {offsets = [0, 1], sizes = [4, 16], strides = [1, 1]} : vector<4x18xf32> to vector<4x16xf32>
    %c28_266 = arith.constant 28 : index
    %c0_267 = arith.constant 0 : index
    %298 = vector.load %arg6[%c28_266, %c0_267] : memref<36x16xf32, #tpu.memory_space<vmem>>, vector<4x16xf32>
    tpu.vector_store %arg6[%c28_266, %c0_267], %297 {strides = array<i32>} : memref<36x16xf32, #tpu.memory_space<vmem>>, vector<4x16xf32>,
    %299 = vector.extract_strided_slice %294 {offsets = [0, 2], sizes = [4, 16], strides = [1, 1]} : vector<4x18xf32> to vector<4x16xf32>
    %c32_268 = arith.constant 32 : index
    %c0_269 = arith.constant 0 : index
    %300 = vector.load %arg6[%c32_268, %c0_269] : memref<36x16xf32, #tpu.memory_space<vmem>>, vector<4x16xf32>
    tpu.vector_store %arg6[%c32_268, %c0_269], %299 {strides = array<i32>} : memref<36x16xf32, #tpu.memory_space<vmem>>, vector<4x16xf32>,
    %c0_270 = arith.constant 0 : index
    %c0_271 = arith.constant 0 : index
    %301 = vector.load %arg6[%c0_270, %c0_271] : memref<36x16xf32, #tpu.memory_space<vmem>>, vector<36x16xf32>
    %302 = arith.truncf %301 : vector<36x16xf32> to vector<36x16xbf16>
    %cst_272 = arith.constant dense<0.000000e+00> : vector<8x16xf32>
    %303 = tpu.matmul %8, %302, %cst_272 {dimension_numbers = #tpu.dot_dimension_numbers<[1], [0], [0], [1], [0, 0, 1, 1], [], []>} : vector<8x36xbf16>, vector<36x16xbf16>, vector<8x16xf32> -> vector<8x16xf32>
    %304 = vector.broadcast %9 : vector<8x1xf32> to vector<8x16xf32>
    %305 = arith.addf %303, %304 : vector<8x16xf32>
    %cst_273 = arith.constant 0.000000e+00 : f32
    %306 = vector.broadcast %cst_273 : f32 to vector<8x16xf32>
    %307 = arith.maximumf %305, %306 : vector<8x16xf32>
    %c0_274 = arith.constant 0 : index
    %c4_275 = arith.constant 4 : index
    %c6 = arith.constant 6 : index
    %c0_276 = arith.constant 0 : index
    %308 = vector.load %arg5[%c0_274, %c4_275, %c6, %c0_276] : memref<1x12x8x16xf32, #tpu.memory_space<vmem>>, vector<1x8x1x16xf32>
    %309 = vector.shape_cast %308 : vector<1x8x1x16xf32> to vector<8x16xf32>
    %310 = vector.shape_cast %307 : vector<8x16xf32> to vector<1x8x1x16xf32>
    tpu.vector_store %arg5[%c0_274, %c4_275, %c6, %c0_276], %310 {strides = array<i32>} : memref<1x12x8x16xf32, #tpu.memory_space<vmem>>, vector<1x8x1x16xf32>,
    %c7_i32 = arith.constant 7 : i32
    %311 = arith.addi %0, %c7_i32 : i32
    %c0_i32_277 = arith.constant 0 : i32
    %312 = arith.addi %311, %c0_i32_277 : i32
    %c0_278 = arith.constant 0 : index
    %c0_279 = arith.constant 0 : index
    %313 = arith.index_cast %312 : i32 to index
    %c0_280 = arith.constant 0 : index
    %314 = vector.load %arg4[%c0_278, %c0_279, %313, %c0_280] : memref<1x4x18x18xf32, #tpu.memory_space<vmem>>, vector<1x4x1x18xf32>
    %315 = vector.shape_cast %314 : vector<1x4x1x18xf32> to vector<4x18xf32>
    %316 = vector.extract_strided_slice %315 {offsets = [0, 0], sizes = [4, 16], strides = [1, 1]} : vector<4x18xf32> to vector<4x16xf32>
    %c0_281 = arith.constant 0 : index
    %c0_282 = arith.constant 0 : index
    %317 = vector.load %arg6[%c0_281, %c0_282] : memref<36x16xf32, #tpu.memory_space<vmem>>, vector<4x16xf32>
    tpu.vector_store %arg6[%c0_281, %c0_282], %316 {strides = array<i32>} : memref<36x16xf32, #tpu.memory_space<vmem>>, vector<4x16xf32>,
    %318 = vector.extract_strided_slice %315 {offsets = [0, 1], sizes = [4, 16], strides = [1, 1]} : vector<4x18xf32> to vector<4x16xf32>
    %c4_283 = arith.constant 4 : index
    %c0_284 = arith.constant 0 : index
    %319 = vector.load %arg6[%c4_283, %c0_284] : memref<36x16xf32, #tpu.memory_space<vmem>>, vector<4x16xf32>
    tpu.vector_store %arg6[%c4_283, %c0_284], %318 {strides = array<i32>} : memref<36x16xf32, #tpu.memory_space<vmem>>, vector<4x16xf32>,
    %320 = vector.extract_strided_slice %315 {offsets = [0, 2], sizes = [4, 16], strides = [1, 1]} : vector<4x18xf32> to vector<4x16xf32>
    %c8_285 = arith.constant 8 : index
    %c0_286 = arith.constant 0 : index
    %321 = vector.load %arg6[%c8_285, %c0_286] : memref<36x16xf32, #tpu.memory_space<vmem>>, vector<4x16xf32>
    tpu.vector_store %arg6[%c8_285, %c0_286], %320 {strides = array<i32>} : memref<36x16xf32, #tpu.memory_space<vmem>>, vector<4x16xf32>,
    %c7_i32_287 = arith.constant 7 : i32
    %322 = arith.addi %0, %c7_i32_287 : i32
    %c1_i32_288 = arith.constant 1 : i32
    %323 = arith.addi %322, %c1_i32_288 : i32
    %c0_289 = arith.constant 0 : index
    %c0_290 = arith.constant 0 : index
    %324 = arith.index_cast %323 : i32 to index
    %c0_291 = arith.constant 0 : index
    %325 = vector.load %arg4[%c0_289, %c0_290, %324, %c0_291] : memref<1x4x18x18xf32, #tpu.memory_space<vmem>>, vector<1x4x1x18xf32>
    %326 = vector.shape_cast %325 : vector<1x4x1x18xf32> to vector<4x18xf32>
    %327 = vector.extract_strided_slice %326 {offsets = [0, 0], sizes = [4, 16], strides = [1, 1]} : vector<4x18xf32> to vector<4x16xf32>
    %c12_292 = arith.constant 12 : index
    %c0_293 = arith.constant 0 : index
    %328 = vector.load %arg6[%c12_292, %c0_293] : memref<36x16xf32, #tpu.memory_space<vmem>>, vector<4x16xf32>
    tpu.vector_store %arg6[%c12_292, %c0_293], %327 {strides = array<i32>} : memref<36x16xf32, #tpu.memory_space<vmem>>, vector<4x16xf32>,
    %329 = vector.extract_strided_slice %326 {offsets = [0, 1], sizes = [4, 16], strides = [1, 1]} : vector<4x18xf32> to vector<4x16xf32>
    %c16_294 = arith.constant 16 : index
    %c0_295 = arith.constant 0 : index
    %330 = vector.load %arg6[%c16_294, %c0_295] : memref<36x16xf32, #tpu.memory_space<vmem>>, vector<4x16xf32>
    tpu.vector_store %arg6[%c16_294, %c0_295], %329 {strides = array<i32>} : memref<36x16xf32, #tpu.memory_space<vmem>>, vector<4x16xf32>,
    %331 = vector.extract_strided_slice %326 {offsets = [0, 2], sizes = [4, 16], strides = [1, 1]} : vector<4x18xf32> to vector<4x16xf32>
    %c20_296 = arith.constant 20 : index
    %c0_297 = arith.constant 0 : index
    %332 = vector.load %arg6[%c20_296, %c0_297] : memref<36x16xf32, #tpu.memory_space<vmem>>, vector<4x16xf32>
    tpu.vector_store %arg6[%c20_296, %c0_297], %331 {strides = array<i32>} : memref<36x16xf32, #tpu.memory_space<vmem>>, vector<4x16xf32>,
    %c7_i32_298 = arith.constant 7 : i32
    %333 = arith.addi %0, %c7_i32_298 : i32
    %c2_i32_299 = arith.constant 2 : i32
    %334 = arith.addi %333, %c2_i32_299 : i32
    %c0_300 = arith.constant 0 : index
    %c0_301 = arith.constant 0 : index
    %335 = arith.index_cast %334 : i32 to index
    %c0_302 = arith.constant 0 : index
    %336 = vector.load %arg4[%c0_300, %c0_301, %335, %c0_302] : memref<1x4x18x18xf32, #tpu.memory_space<vmem>>, vector<1x4x1x18xf32>
    %337 = vector.shape_cast %336 : vector<1x4x1x18xf32> to vector<4x18xf32>
    %338 = vector.extract_strided_slice %337 {offsets = [0, 0], sizes = [4, 16], strides = [1, 1]} : vector<4x18xf32> to vector<4x16xf32>
    %c24_303 = arith.constant 24 : index
    %c0_304 = arith.constant 0 : index
    %339 = vector.load %arg6[%c24_303, %c0_304] : memref<36x16xf32, #tpu.memory_space<vmem>>, vector<4x16xf32>
    tpu.vector_store %arg6[%c24_303, %c0_304], %338 {strides = array<i32>} : memref<36x16xf32, #tpu.memory_space<vmem>>, vector<4x16xf32>,
    %340 = vector.extract_strided_slice %337 {offsets = [0, 1], sizes = [4, 16], strides = [1, 1]} : vector<4x18xf32> to vector<4x16xf32>
    %c28_305 = arith.constant 28 : index
    %c0_306 = arith.constant 0 : index
    %341 = vector.load %arg6[%c28_305, %c0_306] : memref<36x16xf32, #tpu.memory_space<vmem>>, vector<4x16xf32>
    tpu.vector_store %arg6[%c28_305, %c0_306], %340 {strides = array<i32>} : memref<36x16xf32, #tpu.memory_space<vmem>>, vector<4x16xf32>,
    %342 = vector.extract_strided_slice %337 {offsets = [0, 2], sizes = [4, 16], strides = [1, 1]} : vector<4x18xf32> to vector<4x16xf32>
    %c32_307 = arith.constant 32 : index
    %c0_308 = arith.constant 0 : index
    %343 = vector.load %arg6[%c32_307, %c0_308] : memref<36x16xf32, #tpu.memory_space<vmem>>, vector<4x16xf32>
    tpu.vector_store %arg6[%c32_307, %c0_308], %342 {strides = array<i32>} : memref<36x16xf32, #tpu.memory_space<vmem>>, vector<4x16xf32>,
    %c0_309 = arith.constant 0 : index
    %c0_310 = arith.constant 0 : index
    %344 = vector.load %arg6[%c0_309, %c0_310] : memref<36x16xf32, #tpu.memory_space<vmem>>, vector<36x16xf32>
    %345 = arith.truncf %344 : vector<36x16xf32> to vector<36x16xbf16>
    %cst_311 = arith.constant dense<0.000000e+00> : vector<8x16xf32>
    %346 = tpu.matmul %8, %345, %cst_311 {dimension_numbers = #tpu.dot_dimension_numbers<[1], [0], [0], [1], [0, 0, 1, 1], [], []>} : vector<8x36xbf16>, vector<36x16xbf16>, vector<8x16xf32> -> vector<8x16xf32>
    %347 = vector.broadcast %9 : vector<8x1xf32> to vector<8x16xf32>
    %348 = arith.addf %346, %347 : vector<8x16xf32>
    %cst_312 = arith.constant 0.000000e+00 : f32
    %349 = vector.broadcast %cst_312 : f32 to vector<8x16xf32>
    %350 = arith.maximumf %348, %349 : vector<8x16xf32>
    %c0_313 = arith.constant 0 : index
    %c4_314 = arith.constant 4 : index
    %c7 = arith.constant 7 : index
    %c0_315 = arith.constant 0 : index
    %351 = vector.load %arg5[%c0_313, %c4_314, %c7, %c0_315] : memref<1x12x8x16xf32, #tpu.memory_space<vmem>>, vector<1x8x1x16xf32>
    %352 = vector.shape_cast %351 : vector<1x8x1x16xf32> to vector<8x16xf32>
    %353 = vector.shape_cast %350 : vector<8x16xf32> to vector<1x8x1x16xf32>
    tpu.vector_store %arg5[%c0_313, %c4_314, %c7, %c0_315], %353 {strides = array<i32>} : memref<1x12x8x16xf32, #tpu.memory_space<vmem>>, vector<1x8x1x16xf32>,
    return
  }
  func.func @transform_0(%arg0: i32, %arg1: i32) -> (i32, i32) {
    %c0_i32 = arith.constant 0 : i32
    %c0_i32_0 = arith.constant 0 : i32
    %c0_i32_1 = arith.constant 0 : i32
    return %c0_i32, %c0_i32_0 : i32, i32
  }
  func.func @transform_1(%arg0: i32, %arg1: i32) -> (i32, i32) {
    %c0_i32 = arith.constant 0 : i32
    %c0_i32_0 = arith.constant 0 : i32
    %c0_i32_1 = arith.constant 0 : i32
    return %c0_i32, %c0_i32_0 : i32, i32
  }
  func.func @transform_2(%arg0: i32, %arg1: i32) -> (i32, i32, i32, i32) {
    %c0_i32 = arith.constant 0 : i32
    %c0_i32_0 = arith.constant 0 : i32
    %c0_i32_1 = arith.constant 0 : i32
    %c0_i32_2 = arith.constant 0 : i32
    return %arg0, %c0_i32, %c0_i32_0, %c0_i32_1 : i32, i32, i32, i32
  }
  func.func @transform_3(%arg0: i32, %arg1: i32) -> (i32, i32, i32, i32) {
    %c0_i32 = arith.constant 0 : i32
    %c0_i32_0 = arith.constant 0 : i32
    %c0_i32_1 = arith.constant 0 : i32
    return %arg0, %c0_i32, %arg1, %c0_i32_0 : i32, i32, i32, i32
  }
}

</mosaic_0001>

<bundles_post_ra>
// kernel: tpu_custom_call.1
= control target key start
LH: loop header
LB: loop body
LE: loop exit
PB: predicated region body
PF: predicated region fallthrough
CT: control target
= control target key end

     0   :  { %8 = vsyncpa [#allocation4], 0  ;;  %s3229_s0 = inlined_call_operand.vmem [shape: bf16[8,36], index: 0, kind: input, shape index: {}]   ;;  %s3230_s1 = inlined_call_operand.vmem [shape: f32[8,1], index: 1, kind: input, shape index: {}]   ;;  %s3231_s2 = inlined_call_operand.vmem [shape: f32[2,4,18,18], index: 2, kind: input, shape index: {}]   ;;  %s3232_s3 = inlined_call_operand.hbm [shape: f32[2,12,16,16], index: 3, kind: output, shape index: {}]  }
   0x1   :  { %10 = vsyncpa [#allocation4 + $0x1], 0  ;;  %s2395_s12 = smov 0   ;;  %s2397_s13 = smov 0  }
   0x2   :  { %s2399_s14 = smov 0   ;;  %s2401_s15 = smov 0  }
   0x3   :  { %s2403_s16 = smov 0   ;;  %s2405_s17 = smov 0  }
   0x4   :  { %s2407_s18 = smov 0   ;;  %s2409_s19 = smov 0  }
   0x5 LB: > { %s1886_s20 = sadd.s32 4294967295, %s2363_s19   ;;  %s1887_s21 = sadd.s32 4294967294, %s2363_s19   ;;  %s2363_s19 = sphi %s2409_s19, %s16_s19   ;;  %s2359_s18 = sphi %s2407_s18, %s3241_s18   ;;  %s2355_s17 = sphi %s2405_s17, %s3240_s17   ;;  %s2351_s16 = sphi %s2403_s16, %s3239_s16   ;;  %s2347_s15 = sphi %s2401_s15, %s3238_s15   ;;  %s2343_s14 = sphi %s2399_s14, %s3237_s14   ;;  %s2339_s13 = sphi %s2397_s13, %s3236_s13   ;;  %s2335_s12 = sphi %s2395_s12, %s3235_s12  }
   0x6   : > { %s25_s22 = sadd.s32 1, %s2355_s17  ;;  %s28_s23 = sadd.s32 1, %s2359_s18 }
   0x7   : > { %p26_p0 = scmp.ge.s32.totalorder %s25_s22, 2  ;;  %p115_p1 = scmp.ne.s32.totalorder %s2343_s14, %s2339_s13 }
   0x8   : > { %p116_p2 = scmp.eq.s32.totalorder %s1886_s20, 3  ;;  %p121_p5 = scmp.ne.s32.totalorder %s2339_s13, %s2335_s12 }
   0x9   : > { %s3243_s22 = smov (%p26_p0, %s25_s22), 0  ;;  %s3245_s23 = smov (!%p26_p0, %s28_s23), %s2359_s18 }
   0xa   : > { %s101_s24 = ssub.s32 %s2355_s17, %s3243_s22  ;;  %p2446_p3 = por %p116_p2, %p115_p1 }
   0xb   : > { %p30_p4 = scmp.ge.s32.totalorder %s3245_s23, 2  ;;  %p122_p6 = scmp.eq.s32.totalorder %s1887_s21, 3 }
   0xc   : > { %p1890_p7 = scmp.ge.s32.totalorder %s2363_s19, 1  ;;  %p154_p9 = scmp.lt.s32.totalorder %s2363_s19, 5 }
   0xd   : > { %s3247_s23 = smov (%p30_p4, %s3245_s23), 0  ;;  %p2455_p8 = por %p122_p6, %p121_p5 }
   0xe   : > { %s100_s27 = ssub.s32 %s2359_s18, %s3247_s23  ;;  %s105_s28 = sadd.s32 1, %s2343_s14 }
   0xf   : > { %s102_s29 = sor.u32 %s101_s24, %s100_s27  ;;  %p155_p10 = pnand %p1890_p7, %p154_p9 }
  0x10   : > { %p103_p11 = scmp.eq.s32.totalorder %s102_s29, 0  ;;  %p178_p12 = scmp.lt.s32.totalorder (!%p155_p10), %s2351_s16, 1  ;;  %vm224_vm0 = vcmask (!%p155_p10), 1041409   ;;  %vm227_vm1 = vcmask (!%p155_p10), 1042434   ;;  %vm230_vm2 = vcmask (!%p155_p10), 1043459   ;;  %vm233_vm3 = vcmask (!%p155_p10), 125952  }
  0x11   : > { %158 = sbr.rel (%p155_p10) target bundleno = 504 (0x1f8), region = 32  ;;  %s1892_s6 = sshll.u32 (!%p155_p10), %s2347_s15, 3  ;;  %v2366_v40 = vmov (!%p155_p10), 0.0   ;;  %vm2368_vm4 = vmmov (!%p155_p10), 0   ;;  %vm310_vm5 = vcmask (!%p155_p10), 1041408   ;;  %vm306_vm6 = vcmask (!%p155_p10), 293888  }
  0x12   : > { %s2464_s30 = scalar_select %p103_p11, %s2343_s14, %s105_s28  }
  0x13   : > { %s2365_s11 = smov (!%p155_p10), 127   ;;  %2105 = vmatprep.subr.bf16.mxu0 (!%p155_p10), %v2366_v40  ;;  %2115 = vmatprep.subr.bf16.mxu1 (!%p155_p10), %v2366_v40  ;;  %s2367_s20 = smov (!%p155_p10), 126   ;;  %vm207_vm7 = vcmask (!%p155_p10), 130048   ;;  %vm414_vm8 = vcmask (!%p155_p10), 122880  }
  0x14   : > { %2111 = vmatprep.mubr.msk.bf16.mxu0 (!%p155_p10), %vm2368_vm4, %v2366_v40  ;;  %2121 = vmatprep.mubr.msk.bf16.mxu1 (!%p155_p10), %vm2368_vm4, %v2366_v40  ;;  %s175_s29 = sand.u32 (!%p155_p10), 1, %s2339_s13   ;;  %s2371_s21 = smov (!%p155_p10), [#allocation3]  }
  0x15   : > { %s2273_s24 = sshll.u32 (!%p155_p10), %s2371_s21, 4  ;;  %s2274_s24 = int_to_ptr.vmem [resolvable:$false] %s2273_s24 }
  0x16   : > { %s2275_s27 = scalar_lea.vmem (!%p155_p10), %s2274_s24, 3072 }
  0x18   : > { %s179_s4 = scalar_select %p178_p12, %s2351_s16, 1 }
  0x1a   : > { %s2186_s5 = smul.u32 96, %s179_s4 }
  0x1b   : > { %s2185_s4 = smul.u32 96, %s175_s29 }
  0x1c   : > { %s182_s9 = scalar_lea.vmem %s3231_s2, %s2186_s5 }
  0x1d   : > { %s2472_s10 = scalar_lea.vmem %s182_s9, %s1892_s6  ;;  %s2971_s5 = scalar_lea.vmem [#allocation3], %s2185_s4 }
  0x1e   : > { %v1898_v0 = vld [vmem:[%s2472_s10 + $0x1] sm:$0x1]  ;;  %v1899_v1 = vld [vmem:[%s2472_s10 + $0x19] sm:$0x1]  ;;  %v1900_v2 = vld [vmem:[%s2472_s10 + $0x31] sm:$0x1] }
  0x1f   : > { %v1901_v3 = vld [vmem:[%s2472_s10 + $0x49] sm:$0x1]  ;;  %v251_v4 = vrot.slane %v1899_v1, 7  ;;  %v253_v5 = vrot.slane %v1900_v2, 6  ;;  %v215_v6 = vld [vmem:[%s2472_s10] sm:$0x1] }
  0x20   : > { %v255_v7 = vrot.slane %v1901_v3, 5  ;;  %v216_v8 = vld [vmem:[%s2472_s10 + $0x18] sm:$0x1]  ;;  %v217_v9 = vld [vmem:[%s2472_s10 + $0x30] sm:$0x1]  ;;  %s2187_s6 = smul.u32 24, %s2351_s16 }
  0x21   : > { %v252_v10 = vsel %vm224_vm0, %v251_v4, %v1898_v0  ;;  %v218_v11 = vld [vmem:[%s2472_s10 + $0x48] sm:$0x1]  ;;  %v223_v12 = vrot.slane %v216_v8, 7  ;;  %v226_v13 = vrot.slane %v217_v9, 6  ;;  %v1903_v14 = vld [vmem:[%s2472_s10 + $0x2] sm:$0x1] }
  0x22   : > { %v254_v15 = vsel %vm227_vm1, %v253_v5, %v252_v10  ;;  %v229_v16 = vrot.slane %v218_v11, 5  ;;  %v1904_v17 = vld [vmem:[%s2472_s10 + $0x1a] sm:$0x1]  ;;  %v1905_v18 = vld [vmem:[%s2472_s10 + $0x32] sm:$0x1]  ;;  %s1779_s7 = sadd.s32 %s2347_s15, %s2187_s6  ;;  %s1782_s15 = sshll.u32 %s2971_s5, 4  ;;  %s3165_s15 = int_to_ptr.vmem [resolvable:$true] %s1782_s15 }
  0x23   : > { %v256_v19 = vsel %vm230_vm2, %v255_v7, %v254_v15  ;;  %v225_v20 = vsel %vm224_vm0, %v223_v12, %v215_v6  ;;  %v1906_v21 = vld [vmem:[%s2472_s10 + $0x4a] sm:$0x1]  ;;  %v277_v22 = vrot.slane %v1904_v17, 7  ;;  %v279_v23 = vrot.slane %v1905_v18, 6  ;;  %v1916_v24 = vld [vmem:[%s2472_s10 + $0x1] sm:$0x1]  ;;  %p2276_p2 = scmp.lt.s32.totalorder %s3165_s15, %s2274_s24 }
  0x24   : > { %259 = vrot.lane.b32.xlu1 %v256_v19, %s2365_s11  ;;  %258 = vst.msk [vmem:[#allocation2 + $0xc] sm:$0xf] %vm233_vm3, %v256_v19  ;;  %v228_v25 = vsel %vm227_vm1, %v226_v13, %v225_v20  ;;  %v281_v26 = vrot.slane %v1906_v21, 5  ;;  %v1917_v27 = vld [vmem:[%s2472_s10 + $0x19] sm:$0x1]  ;;  %s2070_s16 = sshll.u32 %s1779_s7, 7 }
  0x25   : > { %v1918_v28 = vld [vmem:[%s2472_s10 + $0x31] sm:$0x1]  ;;  %v231_v29 = vsel %vm230_vm2, %v229_v16, %v228_v25  ;;  %v278_v30 = vsel %vm224_vm0, %v277_v22, %v1903_v14  ;;  %v431_v31 = vrot.slane %v1917_v27, 7  ;;  %v1919_v33 = vld [vmem:[%s2472_s10 + $0x49] sm:$0x1] }
  0x26   : > { %235 = vrot.lane.b32.xlu0 %v231_v29, %s2365_s11  ;;  %234 = vst.msk [vmem:[#allocation2] sm:$0xf] %vm233_vm3, %v231_v29  ;;  %v280_v32 = vsel %vm227_vm1, %v279_v23, %v278_v30  ;;  %v433_v34 = vrot.slane %v1918_v28, 6  ;;  %v1921_v35 = vld [vmem:[%s2472_s10 + $0x1a] sm:$0x1]  ;;  %v435_v43 = vrot.slane %v1919_v33, 5 }
  0x27   : > { %v282_v36 = vsel %vm230_vm2, %v281_v26, %v280_v32  ;;  %v432_v37 = vsel %vm224_vm0, %v431_v31, %v1916_v24  ;;  %v1922_v38 = vld [vmem:[%s2472_s10 + $0x32] sm:$0x1]  ;;  %v455_v39 = vrot.slane %v1921_v35, 7  ;;  %v1920_v41 = vld [vmem:[%s2472_s10 + $0x2] sm:$0x1] }
  0x28   : > { %263 = vrot.lane.b32.xlu1 %v256_v19, %s2367_s20  ;;  %284 = vst.msk [vmem:[#allocation2 + $0x18] sm:$0xf] %vm233_vm3, %v282_v36  ;;  %v1926_v42 = vld [vmem:[%s2472_s10 + $0x1b] sm:$0x1]  ;;  %v434_v44 = vsel %vm227_vm1, %v433_v34, %v432_v37  ;;  %v1923_v45 = vld [vmem:[%s2472_s10 + $0x4a] sm:$0x1] }
  0x29   : > { %v457_v46 = vrot.slane %v1922_v38, 6  ;;  %v456_v47 = vsel %vm224_vm0, %v455_v39, %v1920_v41  ;;  %v1927_v48 = vld [vmem:[%s2472_s10 + $0x33] sm:$0x1]  ;;  %v481_v49 = vrot.slane %v1926_v42, 7  ;;  %v1925_v50 = vld [vmem:[%s2472_s10 + $0x3] sm:$0x1]  ;;  %v2521_v52 = vsel %vm230_vm2, %v435_v43, %v434_v44 }
  0x2a   : > { %239 = vrot.lane.b32.xlu0 %v231_v29, %s2367_s20  ;;  %v1939_v51 = vld [vmem:[%s2472_s10 + $0x1a] sm:$0x1]  ;;  %v459_v53 = vrot.slane %v1923_v45, 5  ;;  %v1928_v55 = vld [vmem:[%s2472_s10 + $0x4b] sm:$0x1]  ;;  %v483_v56 = vrot.slane %v1927_v48, 6 }
  0x2b   : > { %v458_v54 = vsel %vm227_vm1, %v457_v46, %v456_v47  ;;  %v482_v57 = vsel %vm224_vm0, %v481_v49, %v1925_v50  ;;  %v1940_v58 = vld [vmem:[%s2472_s10 + $0x32] sm:$0x1]  ;;  %v623_v59 = vrot.slane %v1939_v51, 7  ;;  %v1938_v60 = vld [vmem:[%s2472_s10 + $0x2] sm:$0x1]  ;;  %v485_v63 = vrot.slane %v1928_v55, 5 }
  0x2c   : > { %289 = vrot.lane.b32.xlu1 %v282_v36, %s2367_s20  ;;  %v1943_v61 = vld [vmem:[%s2472_s10 + $0x1b] sm:$0x1]  ;;  %v2533_v62 = vsel %vm230_vm2, %v459_v53, %v458_v54  ;;  %v484_v0 = vsel %vm227_vm1, %v483_v56, %v482_v57  ;;  %v1941_v1 = vld [vmem:[%s2472_s10 + $0x4a] sm:$0x1]  ;;  %v625_v2 = vrot.slane %v1940_v58, 6 }
  0x2d   : > { %v624_v3 = vsel %vm224_vm0, %v623_v59, %v1938_v60  ;;  %v1944_v4 = vld [vmem:[%s2472_s10 + $0x33] sm:$0x1]  ;;  %v647_v5 = vrot.slane %v1943_v61, 7  ;;  %v1948_v6 = vld [vmem:[%s2472_s10 + $0x1c] sm:$0x1]  ;;  %v2547_v9 = vsel %vm230_vm2, %v485_v63, %v484_v0  ;;  %v627_v10 = vrot.slane %v1941_v1, 5 }
  0x2e   : > { %285 = vrot.lane.b32.xlu0 %v282_v36, %s2365_s11  ;;  %v1942_v7 = vld [vmem:[%s2472_s10 + $0x3] sm:$0x1]  ;;  %v1961_v8 = vld [vmem:[%s2472_s10 + $0x1b] sm:$0x1]  ;;  %v626_v11 = vsel %vm227_vm1, %v625_v2, %v624_v3  ;;  %v1945_v12 = vld [vmem:[%s2472_s10 + $0x4b] sm:$0x1] }
  0x2f   : > { %v649_v13 = vrot.slane %v1944_v4, 6  ;;  %v1949_v14 = vld [vmem:[%s2472_s10 + $0x34] sm:$0x1]  ;;  %v673_v15 = vrot.slane %v1948_v6, 7  ;;  %v648_v16 = vsel %vm224_vm0, %v647_v5, %v1942_v7  ;;  %v1947_v17 = vld [vmem:[%s2472_s10 + $0x4] sm:$0x1]  ;;  %v2562_v22 = vsel %vm230_vm2, %v627_v10, %v626_v11 }
  0x30   : > { %443 = vrot.lane.b32.xlu1 %v2521_v52, %s2367_s20  ;;  %v1962_v18 = vld [vmem:[%s2472_s10 + $0x33] sm:$0x1]  ;;  %v815_v19 = vrot.slane %v1961_v8, 7  ;;  %v1960_v20 = vld [vmem:[%s2472_s10 + $0x3] sm:$0x1]  ;;  %v651_v23 = vrot.slane %v1945_v12, 5 }
  0x31   : > { %v1965_v21 = vld [vmem:[%s2472_s10 + $0x1c] sm:$0x1]  ;;  %v1950_v24 = vld [vmem:[%s2472_s10 + $0x4c] sm:$0x1]  ;;  %v675_v25 = vrot.slane %v1949_v14, 6  ;;  %v650_v27 = vsel %vm227_vm1, %v649_v13, %v648_v16  ;;  %v674_v28 = vsel %vm224_vm0, %v673_v15, %v1947_v17  ;;  %v817_v29 = vrot.slane %v1962_v18, 6 }
  0x32   : > { %439 = vrot.lane.b32.xlu0 %v2521_v52, %s2365_s11  ;;  %v1963_v26 = vld [vmem:[%s2472_s10 + $0x4b] sm:$0x1]  ;;  %v1966_v30 = vld [vmem:[%s2472_s10 + $0x34] sm:$0x1]  ;;  %v2572_v31 = vld [vmem:[%s2472_s10 + $0x4c] sm:$0x1]  ;;  %v816_v32 = vsel %vm224_vm0, %v815_v19, %v1960_v20  ;;  %v2583_v37 = vsel %vm230_vm2, %v651_v23, %v650_v27 }
  0x33   : > { %v839_v33 = vrot.slane %v1965_v21, 7  ;;  %v677_v34 = vrot.slane %v1950_v24, 5  ;;  %v819_v35 = vrot.slane %v1963_v26, 5  ;;  %v1964_v36 = vld [vmem:[%s2472_s10 + $0x4] sm:$0x1]  ;;  %v676_v38 = vsel %vm227_vm1, %v675_v25, %v674_v28 }
  0x34   : > { %467 = vrot.lane.b32.xlu1 %v2533_v62, %s2367_s20  ;;  %v841_v39 = vrot.slane %v1966_v30, 6  ;;  %v843_v41 = vrot.slane %v2572_v31, 5  ;;  %v1970_v42 = vld [vmem:[%s2472_s10 + $0x1d] sm:$0x1]  ;;  %v2589_v43 = vld [vmem:[%s2472_s10 + $0x35] sm:$0x1]  ;;  %v818_v44 = vsel %vm227_vm1, %v817_v29, %v816_v32 }
  0x35   : > { %v2008_v45 = vld [vmem:[%s2472_s10 + $0x6] sm:$0x1]  ;;  %v2009_v46 = vld [vmem:[%s2472_s10 + $0x1e] sm:$0x1]  ;;  %v2010_v47 = vld [vmem:[%s2472_s10 + $0x36] sm:$0x1]  ;;  %v840_v48 = vsel %vm224_vm0, %v839_v33, %v1964_v36  ;;  %v2607_v56 = vsel %vm230_vm2, %v677_v34, %v676_v38  ;;  %v2612_v61 = vsel %vm230_vm2, %v819_v35, %v818_v44 }
  0x36   : > { %463 = vrot.lane.b32.xlu0 %v2533_v62, %s2365_s11  ;;  %v1969_v49 = vld [vmem:[%s2472_s10 + $0x5] sm:$0x1]  ;;  %v2600_v50 = vld [vmem:[%s2472_s10 + $0x4d] sm:$0x1]  ;;  %v2011_v51 = vld [vmem:[%s2472_s10 + $0x4e] sm:$0x1]  ;;  %v842_v5 = vsel %vm227_vm1, %v841_v39, %v840_v48 }
  0x37   : > { %v1223_v53 = vrot.slane %v2009_v46, 7  ;;  %v1225_v54 = vrot.slane %v2010_v47, 6  ;;  %v2013_v55 = vld [vmem:[%s2472_s10 + $0x7] sm:$0x1]  ;;  %v865_v57 = vrot.slane %v1970_v42, 7  ;;  %v1227_v58 = vrot.slane %v2011_v51, 5 }
  0x38   : > { %493 = vrot.lane.b32.xlu1 %v2547_v9, %s2367_s20  ;;  %v2014_v59 = vld [vmem:[%s2472_s10 + $0x1f] sm:$0x1]  ;;  %v2015_v60 = vld [vmem:[%s2472_s10 + $0x37] sm:$0x1]  ;;  %v2615_v63 = vld [vmem:[%s2472_s10 + $0x1c] sm:$0x1]  ;;  %v2656_v34 = vsel %vm230_vm2, %v843_v41, %v842_v5 }
  0x39   : > { %v1224_v0 = vsel %vm224_vm0, %v1223_v53, %v2008_v45  ;;  %v2016_v1 = vld [vmem:[%s2472_s10 + $0x4f] sm:$0x1]  ;;  %v1249_v2 = vrot.slane %v2014_v59, 7  ;;  %v1251_v3 = vrot.slane %v2015_v60, 6  ;;  %v2026_v4 = vld [vmem:[%s2472_s10 + $0x6] sm:$0x1]  ;;  %v866_v19 = vsel %vm224_vm0, %v865_v57, %v1969_v49 }
  0x3a   : > { %489 = vrot.lane.b32.xlu0 %v2547_v9, %s2365_s11  ;;  %v867_v6 = vrot.slane %v2589_v43, 6  ;;  %v1226_v7 = vsel %vm227_vm1, %v1225_v54, %v1224_v0  ;;  %v1253_v8 = vrot.slane %v2016_v1, 5  ;;  %v2027_v10 = vld [vmem:[%s2472_s10 + $0x1e] sm:$0x1]  ;;  %v2028_v11 = vld [vmem:[%s2472_s10 + $0x36] sm:$0x1] }
  0x3b   : > { %v2628_v12 = vld [vmem:[%s2472_s10 + $0x34] sm:$0x1]  ;;  %v2631_v13 = vsel %vm230_vm2, %v1227_v58, %v1226_v7  ;;  %v1250_v14 = vsel %vm224_vm0, %v1249_v2, %v2013_v55  ;;  %v2029_v15 = vld [vmem:[%s2472_s10 + $0x4e] sm:$0x1]  ;;  %v1391_v16 = vrot.slane %v2027_v10, 7  ;;  %v1393_v17 = vrot.slane %v2028_v11, 6 }
  0x3c   : > { %635 = vrot.lane.b32.xlu1 %v2562_v22, %s2367_s20  ;;  %v2030_v18 = vld [vmem:[%s2472_s10 + $0x7] sm:$0x1]  ;;  %v869_v20 = vrot.slane %v2600_v50, 5  ;;  %v1252_v21 = vsel %vm227_vm1, %v1251_v3, %v1250_v14  ;;  %v1395_v23 = vrot.slane %v2029_v15, 5  ;;  %v2031_v24 = vld [vmem:[%s2472_s10 + $0x1f] sm:$0x1]  ;;  %v868_v49 = vsel %vm227_vm1, %v867_v6, %v866_v19 }
  0x3d   : > { %v2032_v25 = vld [vmem:[%s2472_s10 + $0x37] sm:$0x1]  ;;  %v1982_v26 = vld [vmem:[%s2472_s10 + $0x4] sm:$0x1]  ;;  %v2645_v27 = vld [vmem:[%s2472_s10 + $0x1d] sm:$0x1]  ;;  %v2648_v28 = vsel %vm230_vm2, %v1253_v8, %v1252_v21  ;;  %v1392_v29 = vsel %vm224_vm0, %v1391_v16, %v2026_v4 }
  0x3e   : > { %631 = vrot.lane.b32.xlu0 %v2562_v22, %s2365_s11  ;;  %v2033_v30 = vld [vmem:[%s2472_s10 + $0x4f] sm:$0x1]  ;;  %v1415_v31 = vrot.slane %v2031_v24, 7  ;;  %v1417_v32 = vrot.slane %v2032_v25, 6  ;;  %v2035_v33 = vld [vmem:[%s2472_s10 + $0x8] sm:$0x1]  ;;  %v1394_v36 = vsel %vm227_vm1, %v1393_v17, %v1392_v29 }
  0x3f   : > { %v1007_v35 = vrot.slane %v2615_v63, 7  ;;  %v1419_v38 = vrot.slane %v2033_v30, 5  ;;  %v2036_v39 = vld [vmem:[%s2472_s10 + $0x20] sm:$0x1]  ;;  %v2037_v42 = vld [vmem:[%s2472_s10 + $0x38] sm:$0x1]  ;;  %v2666_v44 = vsel %vm230_vm2, %v1395_v23, %v1394_v36 }
  0x40   : > { %659 = vrot.lane.b32.xlu1 %v2583_v37, %s2367_s20  ;;  %v2663_v43 = vld [vmem:[%s2472_s10 + $0x4c] sm:$0x1]  ;;  %v1416_v45 = vsel %vm224_vm0, %v1415_v31, %v2030_v18  ;;  %v2038_v41 = vld [vmem:[%s2472_s10 + $0x50] sm:$0x1]  ;;  %v1441_v46 = vrot.slane %v2036_v39, 7  ;;  %v1443_v47 = vrot.slane %v2037_v42, 6  ;;  %v2703_v18 = vsel %vm230_vm2, %v869_v20, %v868_v49 }
  0x41   : > { %v2048_v48 = vld [vmem:[%s2472_s10 + $0x7] sm:$0x1]  ;;  %v1009_v50 = vrot.slane %v2628_v12, 6  ;;  %v1418_v51 = vsel %vm227_vm1, %v1417_v32, %v1416_v45  ;;  %v1445_v53 = vrot.slane %v2038_v41, 5  ;;  %v2049_v54 = vld [vmem:[%s2472_s10 + $0x1f] sm:$0x1]  ;;  %v1008_v2 = vsel %vm224_vm0, %v1007_v35, %v1982_v26 }
  0x42   : > { %655 = vrot.lane.b32.xlu0 %v2583_v37, %s2365_s11  ;;  %v2050_v55 = vld [vmem:[%s2472_s10 + $0x37] sm:$0x1]  ;;  %v1988_v57 = vld [vmem:[%s2472_s10 + $0x35] sm:$0x1]  ;;  %v2680_v58 = vsel %vm230_vm2, %v1419_v38, %v1418_v51  ;;  %v1442_v59 = vsel %vm224_vm0, %v1441_v46, %v2035_v33  ;;  %v2051_v60 = vld [vmem:[%s2472_s10 + $0x4f] sm:$0x1] }
  0x43   : > { %v1583_v63 = vrot.slane %v2049_v54, 7  ;;  %v1585_v0 = vrot.slane %v2050_v55, 6  ;;  %v2052_v1 = vld [vmem:[%s2472_s10 + $0x8] sm:$0x1]  ;;  %v1986_v3 = vld [vmem:[%s2472_s10 + $0x5] sm:$0x1]  ;;  %v1444_v6 = vsel %vm227_vm1, %v1443_v47, %v1442_v59  ;;  %v1010_v20 = vsel %vm227_vm1, %v1009_v50, %v1008_v2 }
  0x44   : > { %685 = vrot.lane.b32.xlu1 %v2607_v56, %s2367_s20  ;;  %v1031_v4 = vrot.slane %v2645_v27, 7  ;;  %v1992_v5 = vld [vmem:[%s2472_s10 + $0x1e] sm:$0x1]  ;;  %v1587_v7 = vrot.slane %v2051_v60, 5  ;;  %v2053_v8 = vld [vmem:[%s2472_s10 + $0x20] sm:$0x1]  ;;  %v2695_v11 = vsel %vm230_vm2, %v1445_v53, %v1444_v6 }
  0x45   : > { %v2054_v10 = vld [vmem:[%s2472_s10 + $0x38] sm:$0x1]  ;;  %v1584_v12 = vsel %vm224_vm0, %v1583_v63, %v2048_v48  ;;  %v2055_v14 = vld [vmem:[%s2472_s10 + $0x50] sm:$0x1]  ;;  %v1607_v15 = vrot.slane %v2053_v8, 7  ;;  %v1011_v19 = vrot.slane %v2663_v43, 5 }
  0x46   : > { %681 = vrot.lane.b32.xlu0 %v2607_v56, %s2365_s11  ;;  %v1609_v16 = vrot.slane %v2054_v10, 6  ;;  %v2057_v17 = vld [vmem:[%s2472_s10 + $0x9] sm:$0x1]  ;;  %v1586_v21 = vsel %vm227_vm1, %v1585_v0, %v1584_v12  ;;  %v1611_v23 = vrot.slane %v2055_v14, 5  ;;  %v2058_v24 = vld [vmem:[%s2472_s10 + $0x21] sm:$0x1]  ;;  %v1032_v38 = vsel %vm224_vm0, %v1031_v4, %v1986_v3 }
  0x47   : > { %v2059_v25 = vld [vmem:[%s2472_s10 + $0x39] sm:$0x1]  ;;  %v2710_v26 = vsel %vm230_vm2, %v1587_v7, %v1586_v21  ;;  %v1608_v27 = vsel %vm224_vm0, %v1607_v15, %v2052_v1  ;;  %v2060_v29 = vld [vmem:[%s2472_s10 + $0x51] sm:$0x1]  ;;  %v1633_v30 = vrot.slane %v2058_v24, 7  ;;  %v1033_v33 = vrot.slane %v1988_v57, 6 }
  0x48   : > { %827 = vrot.lane.b32.xlu1 %v2612_v61, %s2367_s20  ;;  %v1635_v31 = vrot.slane %v2059_v25, 6  ;;  %v1989_v32 = vld [vmem:[%s2472_s10 + $0x4d] sm:$0x1]  ;;  %v1610_v35 = vsel %vm227_vm1, %v1609_v16, %v1608_v27  ;;  %v1637_v36 = vrot.slane %v2060_v29, 5  ;;  %v1993_v39 = vld [vmem:[%s2472_s10 + $0x36] sm:$0x1]  ;;  %v2731_v48 = vsel %vm230_vm2, %v1011_v19, %v1010_v20 }
  0x49   : > { %v1057_v42 = vrot.slane %v1992_v5, 7  ;;  %v2722_v43 = vsel %vm230_vm2, %v1611_v23, %v1610_v35  ;;  %v1634_v45 = vsel %vm224_vm0, %v1633_v30, %v2057_v17  ;;  %v1991_v41 = vld [vmem:[%s2472_s10 + $0x6] sm:$0x1]  ;;  %v2005_v46 = vld [vmem:[%s2472_s10 + $0x1d] sm:$0x1]  ;;  %v1035_v49 = vrot.slane %v1989_v32, 5 }
  0x4a   : > { %823 = vrot.lane.b32.xlu0 %v2612_v61, %s2365_s11  ;;  %v1636_v47 = vsel %vm227_vm1, %v1635_v31, %v1634_v45  ;;  %v1034_v51 = vsel %vm227_vm1, %v1033_v33, %v1032_v38  ;;  %v1994_v53 = vld [vmem:[%s2472_s10 + $0x4e] sm:$0x1]  ;;  %v1059_v54 = vrot.slane %v1993_v39, 6  ;;  %v2006_v57 = vld [vmem:[%s2472_s10 + $0x35] sm:$0x1]  ;;  %v1199_v59 = vrot.slane %v2005_v46, 7 }
  0x4b   : > { %v2734_v50 = vsel %vm230_vm2, %v1637_v36, %v1636_v47  ;;  %v1058_v55 = vsel %vm224_vm0, %v1057_v42, %v1991_v41  ;;  %v2004_v60 = vld [vmem:[%s2472_s10 + $0x5] sm:$0x1]  ;;  %v2746_v63 = vsel %vm230_vm2, %v1035_v49, %v1034_v51  ;;  %v1061_v0 = vrot.slane %v1994_v53, 5  ;;  %v2007_v2 = vld [vmem:[%s2472_s10 + $0x4d] sm:$0x1]  ;;  %v1895_v15 = vld [vmem:[%s2472_s10 + $0x19] sm:$0xff] }
  0x4c   : > { %851 = vrot.lane.b32.xlu1 %v2656_v34, %s2367_s20  ;;  %v1060_v1 = vsel %vm227_vm1, %v1059_v54, %v1058_v55  ;;  %v1201_v3 = vrot.slane %v2006_v57, 6  ;;  %v1200_v4 = vsel %vm224_vm0, %v1199_v59, %v2004_v60  ;;  %v1203_v6 = vrot.slane %v2007_v2, 5  ;;  %v213_v10 = vld [vmem:[%s3230_s1] sm:$0xff]  ;;  %v1896_v16 = vld [vmem:[%s2472_s10 + $0x31] sm:$0xff]  ;;  %v1897_v17 = vld [vmem:[%s2472_s10 + $0x49] sm:$0xff] }
  0x4d   : > { %v2756_v5 = vsel %vm230_vm2, %v1061_v0, %v1060_v1  ;;  %v1894_v12 = vld [vmem:[%s2472_s10 + $0x1] sm:$0xff]  ;;  %v2369_v14 = vmov 0   ;;  %s3163_s10 = scalar_lea.hbm %s3232_s3, %s2070_s16 }
  0x4e   : > { %847 = vrot.lane.b32.xlu0 %v2656_v34, %s2365_s11  ;;  %v1202_v7 = vsel %vm227_vm1, %v1201_v3, %v1200_v4  ;;  %v2844_v51 = vld [vmem:[%s3229_s0] sm:$0xf] }
  0x4f   : > { %v2764_v8 = vsel %vm230_vm2, %v1203_v6, %v1202_v7  ;;  %2268 = vset.pattern.permute.xlu0 %v2369_v14 }
  0x50   : > { %877 = vrot.lane.b32.xlu1 %v2703_v18, %s2367_s20 }
  0x52   : > { %873 = vrot.lane.b32.xlu0 %v2703_v18, %s2365_s11 }
  0x54   : > { %1019 = vrot.lane.b32.xlu1 %v2731_v48, %s2367_s20 }
  0x56   : > { %1015 = vrot.lane.b32.xlu0 %v2731_v48, %s2365_s11 }
  0x58   : > { %1043 = vrot.lane.b32.xlu1 %v2746_v63, %s2367_s20 }
  0x5a   : > { %1039 = vrot.lane.b32.xlu0 %v2746_v63, %s2365_s11 }
  0x5c   : > { %1069 = vrot.lane.b32.xlu1 %v2756_v5, %s2367_s20 }
  0x5e   : > { %1065 = vrot.lane.b32.xlu0 %v2756_v5, %s2365_s11 }
  0x60   : > { %1211 = vrot.lane.b32.xlu1 %v2764_v8, %s2367_s20 }
  0x62   : > { %1207 = vrot.lane.b32.xlu0 %v2764_v8, %s2365_s11 }
  0x64   : > { %1235 = vrot.lane.b32.xlu1 %v2631_v13, %s2367_s20 }
  0x66   : > { %1231 = vrot.lane.b32.xlu0 %v2631_v13, %s2365_s11 }
  0x68   : > { %1261 = vrot.lane.b32.xlu1 %v2648_v28, %s2367_s20 }
  0x6a   : > { %1257 = vrot.lane.b32.xlu0 %v2648_v28, %s2365_s11 }
  0x6c   : > { %1403 = vrot.lane.b32.xlu1 %v2666_v44, %s2367_s20 }
  0x6e   : > { %1399 = vrot.lane.b32.xlu0 %v2666_v44, %s2365_s11 }
  0x70   : > { %1427 = vrot.lane.b32.xlu1 %v2680_v58, %s2367_s20 }
  0x72   : > { %1423 = vrot.lane.b32.xlu0 %v2680_v58, %s2365_s11 }
  0x74   : > { %1453 = vrot.lane.b32.xlu1 %v2695_v11, %s2367_s20 }
  0x76   : > { %1449 = vrot.lane.b32.xlu0 %v2695_v11, %s2365_s11 }
  0x78   : > { %1595 = vrot.lane.b32.xlu1 %v2710_v26, %s2367_s20 }
  0x7a   : > { %1591 = vrot.lane.b32.xlu0 %v2710_v26, %s2365_s11 }
  0x7c   : > { %1619 = vrot.lane.b32.xlu1 %v2722_v43, %s2367_s20 }
  0x7e   : > { %1615 = vrot.lane.b32.xlu0 %v2722_v43, %s2365_s11 }
  0x80   : > { %1645 = vrot.lane.b32.xlu1 %v2734_v50, %s2367_s20  ;;  %s2269_s20 = scalar_lea.vmem %s3165_s15, 1536 }
  0x81   : > { %p2270_p13 = scmp.ne.s32.totalorder %s3165_s15, %s2269_s20  ;;  %p2277_p4 = scmp.lt.s32.totalorder %s2275_s27, %s2269_s20 }
  0x82   : > { %1641 = vrot.lane.b32.xlu0 %v2734_v50, %s2365_s11 }
  0x83   : > { %p2271_p0 = pnand %p2270_p13, %p2446_p3  ;;  %p2278_p5 = por %p2277_p4, %p2276_p2 }
  0x84   : > { %195 = vrot.lane.b32.xlu1 %v1894_v12, %s2365_s11 }
  0x85   : > { %p2272_p1 = pneg %p2271_p0 }
  0x86   : > { %303 = vperm.xlu0 %2268, %v213_v10  }
  0x87   : > { %p2279_p6 = pnand %p2278_p5, %p2272_p1 }
  0x88   : > { %197 = vrot.lane.b32.xlu1 %v1895_v15, %s2365_s11 }
  0x8a   : > { %199 = vrot.lane.b32.xlu0 %v1896_v16, %s2365_s11 }
  0x8c   : > { %201 = vrot.lane.b32.xlu1 %v1897_v17, %s2365_s11  ;;  %s3177_s11 = scalar_lea.sflag [#allocation4], %s175_s29 }
  0x96   : > { %v260_v19 = vpop.permute.xlu1 %259 }
  0x97   : > { %262 = vst.msk [vmem:[#allocation2 + $0x10] sm:$0xf] %vm233_vm3, %v260_v19 }
  0x98   : > { %v236_v21 = vpop.permute.xlu0 %235 }
  0x99   : > { %238 = vst.msk [vmem:[#allocation2 + $0x4] sm:$0xf] %vm233_vm3, %v236_v21 }
  0x9a   : > { %v264_v23 = vpop.permute.xlu1 %263 }
  0x9b   : > { %266 = vst.msk [vmem:[#allocation2 + $0x14] sm:$0xf] %vm233_vm3, %v264_v23 }
  0x9c   : > { %v240_v24 = vpop.permute.xlu0 %239 }
  0x9d   : > { %242 = vst.msk [vmem:[#allocation2 + $0x8] sm:$0xf] %vm233_vm3, %v240_v24 }
  0x9e   : > { %v290_v25 = vpop.permute.xlu1 %289 }
  0x9f   : > { %292 = vst.msk [vmem:[#allocation2 + $0x20] sm:$0xf] %vm233_vm3, %v290_v25 }
  0xa0   : > { %v293_v27 = vld [vmem:[#allocation2] sm:$0xff]  ;;  %v286_v29 = vpop.permute.xlu0 %285 }
  0xa1   : > { %438 = vst.msk [vmem:[#allocation2] sm:$0xf] %vm233_vm3, %v2521_v52  ;;  %288 = vst.msk [vmem:[#allocation2 + $0x1c] sm:$0xf] %vm233_vm3, %v286_v29 }
  0xa2   : > { %v444_v30 = vpop.permute.xlu1 %443  ;;  %v295_v33 = vld [vmem:[#allocation2 + $0x10] sm:$0xff] }
  0xa4   : > { %v294_v31 = vld [vmem:[#allocation2 + $0x8] sm:$0xff]  ;;  %v440_v20 = vpop.permute.xlu0 %439 }
  0xa5   : > { %462 = vst.msk [vmem:[#allocation2 + $0xc] sm:$0xf] %vm233_vm3, %v2533_v62  ;;  %446 = vst.msk [vmem:[#allocation2 + $0x8] sm:$0xf] %vm233_vm3, %v444_v30  ;;  %v298_v32 = vpack.c.bf16 %v294_v31, %v293_v27 }
  0xa6   : > { %442 = vst.msk [vmem:[#allocation2 + $0x4] sm:$0xf] %vm233_vm3, %v440_v20  ;;  %v468_v35 = vpop.permute.xlu1 %467  ;;  %v297_v36 = vld [vmem:[#allocation2 + $0x20] sm:$0xf] }
  0xa7   : > { %2106 = vmatpush3.bf16.msra.mxu0 %v298_v32  ;;  %470 = vst.msk [vmem:[#allocation2 + $0x14] sm:$0xf] %vm233_vm3, %v468_v35  ;;  %v300_v39 = vpack.c.bf16 %v297_v36, %v297_v36 }
  0xa8   : > { %v296_v52 = vld [vmem:[#allocation2 + $0x18] sm:$0xff]  ;;  %v464_v38 = vpop.permute.xlu0 %463  ;;  %2107 = vmatprep.subr.bf16.mxu0 %v2366_v40 }
  0xa9   : > { %488 = vst.msk [vmem:[#allocation2 + $0x18] sm:$0xf] %vm233_vm3, %v2547_v9  ;;  %466 = vst.msk [vmem:[#allocation2 + $0x10] sm:$0xf] %vm233_vm3, %v464_v38  ;;  %v299_v62 = vpack.c.bf16 %v296_v52, %v295_v33  ;;  %v312_v47 = vsel %vm310_vm5, %v300_v39, 0 }
  0xaa   : > { %v494_v42 = vpop.permute.xlu1 %493 }
  0xab   : > { %2108 = vmatpush3.bf16.msra.mxu0 %v299_v62  ;;  %496 = vst.msk [vmem:[#allocation2 + $0x20] sm:$0xf] %vm233_vm3, %v494_v42 }
  0xac   : > { %v498_v45 = vld [vmem:[#allocation2 + $0x8] sm:$0xff]  ;;  %v490_v46 = vpop.permute.xlu0 %489  ;;  %2109 = vmatprep.subr.bf16.mxu0 %v2366_v40 }
  0xad   : > { %v497_v41 = vld [vmem:[#allocation2] sm:$0xff]  ;;  %654 = vst.msk [vmem:[#allocation2 + $0xc] sm:$0xf] %vm233_vm3, %v2583_v37  ;;  %492 = vst.msk [vmem:[#allocation2 + $0x1c] sm:$0xf] %vm233_vm3, %v490_v46 }
  0xae   : > { %630 = vst.msk [vmem:[#allocation2] sm:$0xf] %vm233_vm3, %v2562_v22  ;;  %v502_v9 = vpack.c.bf16 %v498_v45, %v497_v41  ;;  %v636_v49 = vpop.permute.xlu1 %635 }
  0xaf   : > { %2110 = vmatpush3.bf16.msra.mxu0 %v312_v47  ;;  %638 = vst.msk [vmem:[#allocation2 + $0x8] sm:$0xf] %vm233_vm3, %v636_v49 }
  0xb0   : > { %2116 = vmatpush3.bf16.msra.mxu1 %v502_v9  ;;  %v632_v53 = vpop.permute.xlu0 %631  ;;  %2125 = vmatprep.subr.bf16.mxu0 %v2366_v40  ;;  %v499_v22 = vld [vmem:[#allocation2 + $0x10] sm:$0xff] }
  0xb1   : > { %2117 = vmatprep.subr.bf16.mxu1 %v2366_v40  ;;  %634 = vst.msk [vmem:[#allocation2 + $0x4] sm:$0xf] %vm233_vm3, %v632_v53 }
  0xb2   : > { %v660_v37 = vpop.permute.xlu1 %659  ;;  %v501_v54 = vld [vmem:[#allocation2 + $0x20] sm:$0xf]  ;;  %2112 = vmatmul.mubr.msk.bf16.vlgmr.msra.gmra.mrb[0].mxu0 %vm306_vm6, %v2844_v51 }
  0xb3   : > { %662 = vst.msk [vmem:[#allocation2 + $0x14] sm:$0xf] %vm233_vm3, %v660_v37  ;;  %2131 = vmatprep.mubr.msk.bf16.mxu0 %vm2368_vm4, %v2366_v40  ;;  %v504_v59 = vpack.c.bf16 %v501_v54, %v501_v54 }
  0xb4   : > { %v500_v55 = vld [vmem:[#allocation2 + $0x18] sm:$0xff]  ;;  %v656_v57 = vpop.permute.xlu0 %655 }
  0xb5   : > { %680 = vst.msk [vmem:[#allocation2 + $0x18] sm:$0xf] %vm233_vm3, %v2607_v56  ;;  %658 = vst.msk [vmem:[#allocation2 + $0x10] sm:$0xf] %vm233_vm3, %v656_v57  ;;  %v503_v60 = vpack.c.bf16 %v500_v55, %v499_v22  ;;  %v506_v3 = vsel %vm310_vm5, %v504_v59, 0 }
  0xb6   : > { %v686_v0 = vpop.permute.xlu1 %685  ;;  %v690_v1 = vld [vmem:[#allocation2 + $0x8] sm:$0xff] }
  0xb7   : > { %2118 = vmatpush3.bf16.msra.mxu1 %v503_v60  ;;  %688 = vst.msk [vmem:[#allocation2 + $0x20] sm:$0xf] %vm233_vm3, %v686_v0  ;;  %846 = vst.msk [vmem:[#allocation2 + $0xc] sm:$0xf] %vm233_vm3, %v2656_v34 }
  0xb8   : > { %v682_v2 = vpop.permute.xlu0 %681  ;;  %2119 = vmatprep.subr.bf16.mxu1 %v2366_v40  ;;  %v689_v4 = vld [vmem:[#allocation2] sm:$0xff] }
  0xb9   : > { %684 = vst.msk [vmem:[#allocation2 + $0x1c] sm:$0xf] %vm233_vm3, %v682_v2  ;;  %v694_v56 = vpack.c.bf16 %v690_v1, %v689_v4  ;;  %822 = vst.msk [vmem:[#allocation2] sm:$0xf] %vm233_vm3, %v2612_v61 }
  0xba   : > { %v828_v6 = vpop.permute.xlu1 %827 }
  0xbb   : > { %2120 = vmatpush3.bf16.msra.mxu1 %v506_v3  ;;  %2126 = vmatpush3.bf16.msra.mxu0 %v694_v56  ;;  %830 = vst.msk [vmem:[#allocation2 + $0x8] sm:$0xf] %vm233_vm3, %v828_v6 }
  0xbc   : > { %v824_v7 = vpop.permute.xlu0 %823  ;;  %2127 = vmatprep.subr.bf16.mxu0 %v2366_v40  ;;  %2135 = vmatprep.subr.bf16.mxu1 %v2366_v40  ;;  %v691_v34 = vld [vmem:[#allocation2 + $0x10] sm:$0xff] }
  0xbd   : > { %826 = vst.msk [vmem:[#allocation2 + $0x4] sm:$0xf] %vm233_vm3, %v824_v7 }
  0xbe   : > { %v852_v10 = vpop.permute.xlu1 %851  ;;  %v693_v12 = vld [vmem:[#allocation2 + $0x20] sm:$0xf]  ;;  %2122 = vmatmul.mubr.msk.bf16.vlgmr.msra.gmra.mrb[0].mxu1 %vm306_vm6, %v2844_v51 }
  0xbf   : > { %854 = vst.msk [vmem:[#allocation2 + $0x14] sm:$0xf] %vm233_vm3, %v852_v10  ;;  %2141 = vmatprep.mubr.msk.bf16.mxu1 %vm2368_vm4, %v2366_v40  ;;  %v696_v15 = vpack.c.bf16 %v693_v12, %v693_v12 }
  0xc0   : > { %v848_v61 = vpop.permute.xlu0 %847  ;;  %v692_v14 = vld [vmem:[#allocation2 + $0x18] sm:$0xff] }
  0xc1   : > { %850 = vst.msk [vmem:[#allocation2 + $0x10] sm:$0xf] %vm233_vm3, %v848_v61  ;;  %v695_v16 = vpack.c.bf16 %v692_v14, %v691_v34  ;;  %872 = vst.msk [vmem:[#allocation2 + $0x18] sm:$0xf] %vm233_vm3, %v2703_v18  ;;  %v698_v23 = vsel %vm310_vm5, %v696_v15, 0 }
  0xc2   : > { %v878_v17 = vpop.permute.xlu1 %877  ;;  %v882_v19 = vld [vmem:[#allocation2 + $0x8] sm:$0xff] }
  0xc3   : > { %2128 = vmatpush3.bf16.msra.mxu0 %v695_v16  ;;  %880 = vst.msk [vmem:[#allocation2 + $0x20] sm:$0xf] %vm233_vm3, %v878_v17  ;;  %1038 = vst.msk [vmem:[#allocation2 + $0xc] sm:$0xf] %vm233_vm3, %v2746_v63 }
  0xc4   : > { %v874_v21 = vpop.permute.xlu0 %873  ;;  %2129 = vmatprep.subr.bf16.mxu0 %v2366_v40  ;;  %v881_v24 = vld [vmem:[#allocation2] sm:$0xff] }
  0xc5   : > { %876 = vst.msk [vmem:[#allocation2 + $0x1c] sm:$0xf] %vm233_vm3, %v874_v21  ;;  %v886_v25 = vpack.c.bf16 %v882_v19, %v881_v24  ;;  %1014 = vst.msk [vmem:[#allocation2] sm:$0xf] %vm233_vm3, %v2731_v48 }
  0xc6   : > { %v1020_v18 = vpop.permute.xlu1 %1019 }
  0xc7   : > { %2130 = vmatpush3.bf16.msra.mxu0 %v698_v23  ;;  %2136 = vmatpush3.bf16.msra.mxu1 %v886_v25  ;;  %1022 = vst.msk [vmem:[#allocation2 + $0x8] sm:$0xf] %vm233_vm3, %v1020_v18 }
  0xc8   : > { %v1016_v27 = vpop.permute.xlu0 %1015  ;;  %2137 = vmatprep.subr.bf16.mxu1 %v2366_v40  ;;  %2145 = vmatprep.subr.bf16.mxu0 %v2366_v40  ;;  %v883_v29 = vld [vmem:[#allocation2 + $0x10] sm:$0xff] }
  0xc9   : > { %1018 = vst.msk [vmem:[#allocation2 + $0x4] sm:$0xf] %vm233_vm3, %v1016_v27 }
  0xca   : > { %v1044_v63 = vpop.permute.xlu1 %1043  ;;  %v885_v30 = vld [vmem:[#allocation2 + $0x20] sm:$0xf]  ;;  %2132 = vmatmul.mubr.msk.bf16.vlgmr.msra.gmra.mrb[4].mxu0 %vm306_vm6, %v2844_v51 }
  0xcb   : > { %1046 = vst.msk [vmem:[#allocation2 + $0x14] sm:$0xf] %vm233_vm3, %v1044_v63  ;;  %2151 = vmatprep.mubr.msk.bf16.mxu0 %vm2368_vm4, %v2366_v40  ;;  %v888_v20 = vpack.c.bf16 %v885_v30, %v885_v30 }
  0xcc   : > { %v1040_v48 = vpop.permute.xlu0 %1039  ;;  %v884_v31 = vld [vmem:[#allocation2 + $0x18] sm:$0xff] }
  0xcd   : > { %1042 = vst.msk [vmem:[#allocation2 + $0x10] sm:$0xf] %vm233_vm3, %v1040_v48  ;;  %v887_v32 = vpack.c.bf16 %v884_v31, %v883_v29  ;;  %1064 = vst.msk [vmem:[#allocation2 + $0x18] sm:$0xf] %vm233_vm3, %v2756_v5  ;;  %v890_v52 = vsel %vm310_vm5, %v888_v20, 0 }
  0xce   : > { %v1070_v33 = vpop.permute.xlu1 %1069  ;;  %v1074_v35 = vld [vmem:[#allocation2 + $0x8] sm:$0xff] }
  0xcf   : > { %2138 = vmatpush3.bf16.msra.mxu1 %v887_v32  ;;  %1072 = vst.msk [vmem:[#allocation2 + $0x20] sm:$0xf] %vm233_vm3, %v1070_v33  ;;  %1230 = vst.msk [vmem:[#allocation2 + $0xc] sm:$0xf] %vm233_vm3, %v2631_v13  ;;  %v360_v33 = vlaneseq }
  0xd0   : > { %v1066_v36 = vpop.permute.xlu0 %1065  ;;  %2139 = vmatprep.subr.bf16.mxu1 %v2366_v40  ;;  %v1073_v38 = vld [vmem:[#allocation2] sm:$0xff] }
  0xd1   : > { %1068 = vst.msk [vmem:[#allocation2 + $0x1c] sm:$0xf] %vm233_vm3, %v1066_v36  ;;  %v1078_v39 = vpack.c.bf16 %v1074_v35, %v1073_v38  ;;  %1206 = vst.msk [vmem:[#allocation2] sm:$0xf] %vm233_vm3, %v2764_v8  ;;  %v361_v36 = vshrl.u32 %v360_v33, 7 }
  0xd2   : > { %v1212_v5 = vpop.permute.xlu1 %1211 }
  0xd3   : > { %2140 = vmatpush3.bf16.msra.mxu1 %v890_v52  ;;  %2146 = vmatpush3.bf16.msra.mxu0 %v1078_v39  ;;  %1214 = vst.msk [vmem:[#allocation2 + $0x8] sm:$0xf] %vm233_vm3, %v1212_v5 }
  0xd4   : > { %v1208_v62 = vpop.permute.xlu0 %1207  ;;  %2147 = vmatprep.subr.bf16.mxu0 %v2366_v40  ;;  %2155 = vmatprep.subr.bf16.mxu1 %v2366_v40  ;;  %v1075_v42 = vld [vmem:[#allocation2 + $0x10] sm:$0xff] }
  0xd5   : > { %1210 = vst.msk [vmem:[#allocation2 + $0x4] sm:$0xf] %vm233_vm3, %v1208_v62 }
  0xd6   : > { %v1236_v13 = vpop.permute.xlu1 %1235  ;;  %2142 = vmatmul.mubr.msk.bf16.vlgmr.msra.gmra.mrb[4].mxu1 %vm306_vm6, %v2844_v51  ;;  %v1077_v45 = vld [vmem:[#allocation2 + $0x20] sm:$0xf] }
  0xd7   : > { %1238 = vst.msk [vmem:[#allocation2 + $0x14] sm:$0xf] %vm233_vm3, %v1236_v13  ;;  %2161 = vmatprep.mubr.msk.bf16.mxu1 %vm2368_vm4, %v2366_v40  ;;  %v1080_v46 = vpack.c.bf16 %v1077_v45, %v1077_v45 }
  0xd8   : > { %v1232_v8 = vpop.permute.xlu0 %1231  ;;  %v1076_v41 = vld [vmem:[#allocation2 + $0x18] sm:$0xff] }
  0xd9   : > { %1234 = vst.msk [vmem:[#allocation2 + $0x10] sm:$0xf] %vm233_vm3, %v1232_v8  ;;  %v1079_v47 = vpack.c.bf16 %v1076_v41, %v1075_v42  ;;  %1256 = vst.msk [vmem:[#allocation2 + $0x18] sm:$0xf] %vm233_vm3, %v2648_v28  ;;  %v1082_v22 = vsel %vm310_vm5, %v1080_v46, 0 }
  0xda   : > { %v1262_v9 = vpop.permute.xlu1 %1261  ;;  %v1266_v49 = vld [vmem:[#allocation2 + $0x8] sm:$0xff] }
  0xdb   : > { %2148 = vmatpush3.bf16.msra.mxu0 %v1079_v47  ;;  %1264 = vst.msk [vmem:[#allocation2 + $0x20] sm:$0xf] %vm233_vm3, %v1262_v9  ;;  %1422 = vst.msk [vmem:[#allocation2 + $0xc] sm:$0xf] %vm233_vm3, %v2680_v58 }
  0xdc   : > { %v1258_v53 = vpop.permute.xlu0 %1257  ;;  %2149 = vmatprep.subr.bf16.mxu0 %v2366_v40  ;;  %v1265_v37 = vld [vmem:[#allocation2] sm:$0xff] }
  0xdd   : > { %1260 = vst.msk [vmem:[#allocation2 + $0x1c] sm:$0xf] %vm233_vm3, %v1258_v53  ;;  %v1270_v54 = vpack.c.bf16 %v1266_v49, %v1265_v37  ;;  %1398 = vst.msk [vmem:[#allocation2] sm:$0xf] %vm233_vm3, %v2666_v44 }
  0xde   : > { %v1404_v28 = vpop.permute.xlu1 %1403 }
  0xdf   : > { %2150 = vmatpush3.bf16.msra.mxu0 %v1082_v22  ;;  %2156 = vmatpush3.bf16.msra.mxu1 %v1270_v54  ;;  %1406 = vst.msk [vmem:[#allocation2 + $0x8] sm:$0xf] %vm233_vm3, %v1404_v28 }
  0xe0   : > { %v1400_v55 = vpop.permute.xlu0 %1399  ;;  %2157 = vmatprep.subr.bf16.mxu1 %v2366_v40  ;;  %2165 = vmatprep.subr.bf16.mxu0 %v2366_v40  ;;  %v1267_v57 = vld [vmem:[#allocation2 + $0x10] sm:$0xff] }
  0xe1   : > { %1402 = vst.msk [vmem:[#allocation2 + $0x4] sm:$0xf] %vm233_vm3, %v1400_v55 }
  0xe2   : > { %v1428_v58 = vpop.permute.xlu1 %1427  ;;  %2152 = vmatmul.mubr.msk.bf16.vlgmr.msra.gmra.mrb[8].mxu0 %vm306_vm6, %v2844_v51  ;;  %v1269_v59 = vld [vmem:[#allocation2 + $0x20] sm:$0xf] }
  0xe3   : > { %1430 = vst.msk [vmem:[#allocation2 + $0x14] sm:$0xf] %vm233_vm3, %v1428_v58  ;;  %2171 = vmatprep.mubr.msk.bf16.mxu0 %vm2368_vm4, %v2366_v40  ;;  %v1272_v0 = vpack.c.bf16 %v1269_v59, %v1269_v59 }
  0xe4   : > { %v1424_v44 = vpop.permute.xlu0 %1423  ;;  %v1268_v60 = vld [vmem:[#allocation2 + $0x18] sm:$0xff] }
  0xe5   : > { %v1271_v1 = vpack.c.bf16 %v1268_v60, %v1267_v57  ;;  %1426 = vst.msk [vmem:[#allocation2 + $0x10] sm:$0xf] %vm233_vm3, %v1424_v44  ;;  %1448 = vst.msk [vmem:[#allocation2 + $0x18] sm:$0xf] %vm233_vm3, %v2695_v11  ;;  %v1274_v56 = vsel %vm310_vm5, %v1272_v0, 0 }
  0xe6   : > { %v1454_v2 = vpop.permute.xlu1 %1453  ;;  %v1458_v3 = vld [vmem:[#allocation2 + $0x8] sm:$0xff] }
  0xe7   : > { %2158 = vmatpush3.bf16.msra.mxu1 %v1271_v1  ;;  %1456 = vst.msk [vmem:[#allocation2 + $0x20] sm:$0xf] %vm233_vm3, %v1454_v2  ;;  %1614 = vst.msk [vmem:[#allocation2 + $0xc] sm:$0xf] %vm233_vm3, %v2722_v43 }
  0xe8   : > { %v1450_v4 = vpop.permute.xlu0 %1449  ;;  %2159 = vmatprep.subr.bf16.mxu1 %v2366_v40  ;;  %v1457_v6 = vld [vmem:[#allocation2] sm:$0xff] }
  0xe9   : > { %1452 = vst.msk [vmem:[#allocation2 + $0x1c] sm:$0xf] %vm233_vm3, %v1450_v4  ;;  %v1462_v7 = vpack.c.bf16 %v1458_v3, %v1457_v6  ;;  %1590 = vst.msk [vmem:[#allocation2] sm:$0xf] %vm233_vm3, %v2710_v26 }
  0xea   : > { %v1596_v11 = vpop.permute.xlu1 %1595 }
  0xeb   : > { %2160 = vmatpush3.bf16.msra.mxu1 %v1274_v56  ;;  %2166 = vmatpush3.bf16.msra.mxu0 %v1462_v7  ;;  %1598 = vst.msk [vmem:[#allocation2 + $0x8] sm:$0xf] %vm233_vm3, %v1596_v11 }
  0xec   : > { %v1592_v34 = vpop.permute.xlu0 %1591  ;;  %2167 = vmatprep.subr.bf16.mxu0 %v2366_v40  ;;  %2175 = vmatprep.subr.bf16.mxu1 %v2366_v40  ;;  %v1459_v10 = vld [vmem:[#allocation2 + $0x10] sm:$0xff] }
  0xed   : > { %1594 = vst.msk [vmem:[#allocation2 + $0x4] sm:$0xf] %vm233_vm3, %v1592_v34 }
  0xee   : > { %v1620_v43 = vpop.permute.xlu1 %1619  ;;  %2162 = vmatmul.mubr.msk.bf16.vlgmr.msra.gmra.mrb[8].mxu1 %vm306_vm6, %v2844_v51  ;;  %v1461_v12 = vld [vmem:[#allocation2 + $0x20] sm:$0xf] }
  0xef   : > { %1622 = vst.msk [vmem:[#allocation2 + $0x14] sm:$0xf] %vm233_vm3, %v1620_v43  ;;  %2181 = vmatprep.mubr.msk.bf16.mxu1 %vm2368_vm4, %v2366_v40  ;;  %v1464_v14 = vpack.c.bf16 %v1461_v12, %v1461_v12 }
  0xf0   : > { %v1616_v26 = vpop.permute.xlu0 %1615  ;;  %v1460_v61 = vld [vmem:[#allocation2 + $0x18] sm:$0xff] }
  0xf1   : > { %v1463_v15 = vpack.c.bf16 %v1460_v61, %v1459_v10  ;;  %1618 = vst.msk [vmem:[#allocation2 + $0x10] sm:$0xf] %vm233_vm3, %v1616_v26  ;;  %1640 = vst.msk [vmem:[#allocation2 + $0x18] sm:$0xf] %vm233_vm3, %v2734_v50  ;;  %v1466_v21 = vsel %vm310_vm5, %v1464_v14, 0 }
  0xf2   : > { %v1646_v16 = vpop.permute.xlu1 %1645  ;;  %v1650_v17 = vld [vmem:[#allocation2 + $0x8] sm:$0xff] }
  0xf3   : > { %2168 = vmatpush3.bf16.msra.mxu0 %v1463_v15  ;;  %1648 = vst.msk [vmem:[#allocation2 + $0x20] sm:$0xf] %vm233_vm3, %v1646_v16 }
  0xf4   : > { %v1642_v19 = vpop.permute.xlu0 %1641  ;;  %2169 = vmatprep.subr.bf16.mxu0 %v2366_v40  ;;  %v1649_v23 = vld [vmem:[#allocation2] sm:$0xff] }
  0xf5   : > { %1644 = vst.msk [vmem:[#allocation2 + $0x1c] sm:$0xf] %vm233_vm3, %v1642_v19  ;;  %v1654_v24 = vpack.c.bf16 %v1650_v17, %v1649_v23 }
  0xf6   : > { %v196_v30 = vpop.permute.xlu1 %195 }
  0xf7   : > { %2170 = vmatpush3.bf16.msra.mxu0 %v1466_v21  ;;  %2176 = vmatpush3.bf16.msra.mxu1 %v1654_v24  ;;  %208 = vst.msk [vmem:[%s2971_s5] sm:$0xff] %vm207_vm7, %v196_v30 }
  0xf8   : > { %2177 = vmatprep.subr.bf16.mxu1 %v2366_v40  ;;  %v1651_v25 = vld [vmem:[#allocation2 + $0x10] sm:$0xff] }
  0xfa   : > { %2172 = vmatmul.mubr.msk.bf16.vlgmr.msra.gmra.mrb[12].mxu0 %vm306_vm6, %v2844_v51  ;;  %v1653_v50 = vld [vmem:[#allocation2 + $0x20] sm:$0xf] }
  0xfb   : > { %v1656_v27 = vpack.c.bf16 %v1653_v50, %v1653_v50 }
  0xfc   : > { %v1652_v18 = vld [vmem:[#allocation2 + $0x18] sm:$0xff] }
  0xfd   : > { %v1655_v63 = vpack.c.bf16 %v1652_v18, %v1651_v25  ;;  %v1658_v29 = vsel %vm310_vm5, %v1656_v27, 0 }
  0xff   : > { %2178 = vmatpush3.bf16.msra.mxu1 %v1655_v63 }
 0x100   : > { %2179 = vmatprep.subr.bf16.mxu1 %v2366_v40  ;;  %v198_v40 = vpop.permute.xlu1 %197 }
 0x101   : > { %209 = vst.msk [vmem:[%s2971_s5 + $0x8] sm:$0xff] %vm207_vm7, %v198_v40 }
 0x103   : > { %2180 = vmatpush3.bf16.msra.mxu1 %v1658_v29 }
 0x104   : > { %v202_v20 = vpop.permute.xlu1 %201 }
 0x105   : > { %v2974_v48 = vpop.permute.xlu0 %303  ;;  %211 = vst.msk [vmem:[%s2971_s5 + $0x18] sm:$0xff] %vm207_vm7, %v202_v20 }
 0x106   : > { %2182 = vmatmul.mubr.msk.bf16.vlgmr.msra.gmra.mrb[12].mxu1 %vm306_vm6, %v2844_v51  ;;  %v2370_v51 = vmov 1966171168  }
 0x107   : > { %v358_v32 = vunpack.c.l.s4 %v2370_v51 }
 0x109   : > { %v200_v31 = vpop.permute.xlu0 %199  ;;  %v359_v35 = vunpack.c.0.s8 %v358_v32 }
 0x10a   : > { %210 = vst.msk [vmem:[%s2971_s5 + $0x10] sm:$0xff] %vm207_vm7, %v200_v31 }
 0x10b   : > { %v2979_v39 = vsub.s32 %v359_v35, %v361_v36 }
 0x185   : > { %v348_v52 = vpop.f32.mrb[0].mxu0 }
 0x186   : > { %v2113_v38 = vpop.f32.mrb[1].mxu0  ;;  %v349_v5 = vadd.f32 %v348_v52, %v2974_v48 }
 0x187   : > { %v351_v62 = vpop.f32.mrb[2].mxu0 }
 0x188   : > { %v354_v13 = vmax.f32 %v349_v5, 0.0  ;;  %v2114_v42 = vpop.f32.mrb[3].mxu0 }
 0x18a   : > { %v356_v45 = vcombine.high %v354_v13, %v354_v13  ;;  %v363_v8 = vrot.slane %v354_v13, %v2979_v39 }
 0x18c   : > { %v370_v41 = vrot.slane %v356_v45, %v2979_v39  ;;  %v371_v46 = vcombine.high %v363_v8, %v363_v8  ;;  %v379_v47 = vrot.slane %v363_v8, %v2979_v39 }
 0x18e   : > { %v372_v9 = vcombine.high %v370_v41, %v370_v41  ;;  %v386_v49 = vrot.slane %v370_v41, %v2979_v39  ;;  %v393_v53 = vrot.slane %v371_v46, %v2979_v39  ;;  %v401_v22 = vcombine.high %v379_v47, %v379_v47  ;;  %1908 = vst.msk [vmem:[%s2971_s5 + $0x20] sm:$0x1] %vm414_vm8, %v379_v47 }
 0x190   : > { %v400_v37 = vrot.slane %v372_v9, %v2979_v39  ;;  %v402_v54 = vcombine.high %v386_v49, %v386_v49  ;;  %v403_v28 = vcombine.high %v393_v53, %v393_v53  ;;  %1909 = vst.msk [vmem:[%s2971_s5 + $0x28] sm:$0x1] %vm414_vm8, %v393_v53  ;;  %1910 = vst.msk [vmem:[%s2971_s5 + $0x30] sm:$0x1] %vm414_vm8, %v401_v22 }
 0x191   : > { %1912 = vst.msk [vmem:[%s2971_s5 + $0x40] sm:$0x1] %vm414_vm8, %v386_v49  ;;  %v542_v55 = vpop.f32.mrb[0].mxu1 }
 0x192   : > { %v2123_v58 = vpop.f32.mrb[1].mxu1  ;;  %v404_v57 = vcombine.high %v400_v37, %v400_v37  ;;  %1911 = vst.msk [vmem:[%s2971_s5 + $0x38] sm:$0x1] %vm414_vm8, %v403_v28  ;;  %1913 = vst.msk [vmem:[%s2971_s5 + $0x48] sm:$0x1] %vm414_vm8, %v400_v37  ;;  %v543_v59 = vadd.f32 %v542_v55, %v2974_v48 }
 0x193   : > { %1914 = vst.msk [vmem:[%s2971_s5 + $0x50] sm:$0x1] %vm414_vm8, %v402_v54  ;;  %v545_v44 = vpop.f32.mrb[2].mxu1 }
 0x194   : > { %1915 = vst.msk [vmem:[%s2971_s5 + $0x58] sm:$0x1] %vm414_vm8, %v404_v57  ;;  %v548_v60 = vmax.f32 %v543_v59, 0.0  ;;  %v2124_v0 = vpop.f32.mrb[3].mxu1 }
 0x196   : > { %v550_v1 = vcombine.high %v548_v60, %v548_v60  ;;  %v557_v2 = vrot.slane %v548_v60, %v2979_v39 }
 0x198   : > { %v564_v3 = vrot.slane %v550_v1, %v2979_v39  ;;  %v565_v4 = vcombine.high %v557_v2, %v557_v2  ;;  %v573_v56 = vrot.slane %v557_v2, %v2979_v39 }
 0x19a   : > { %v566_v6 = vcombine.high %v564_v3, %v564_v3  ;;  %v580_v7 = vrot.slane %v564_v3, %v2979_v39  ;;  %v587_v11 = vrot.slane %v565_v4, %v2979_v39  ;;  %v595_v34 = vcombine.high %v573_v56, %v573_v56  ;;  %1930 = vst.msk [vmem:[%s2971_s5 + $0x21] sm:$0x1] %vm414_vm8, %v573_v56 }
 0x19c   : > { %v594_v43 = vrot.slane %v566_v6, %v2979_v39  ;;  %v596_v10 = vcombine.high %v580_v7, %v580_v7  ;;  %v597_v12 = vcombine.high %v587_v11, %v587_v11  ;;  %1931 = vst.msk [vmem:[%s2971_s5 + $0x29] sm:$0x1] %vm414_vm8, %v587_v11  ;;  %1932 = vst.msk [vmem:[%s2971_s5 + $0x31] sm:$0x1] %vm414_vm8, %v595_v34 }
 0x19d   : > { %1934 = vst.msk [vmem:[%s2971_s5 + $0x41] sm:$0x1] %vm414_vm8, %v580_v7  ;;  %v734_v26 = vpop.f32.mrb[4].mxu0 }
 0x19e   : > { %v598_v61 = vcombine.high %v594_v43, %v594_v43  ;;  %1933 = vst.msk [vmem:[%s2971_s5 + $0x39] sm:$0x1] %vm414_vm8, %v597_v12  ;;  %1935 = vst.msk [vmem:[%s2971_s5 + $0x49] sm:$0x1] %vm414_vm8, %v594_v43  ;;  %v735_v14 = vadd.f32 %v734_v26, %v2974_v48  ;;  %v2133_v15 = vpop.f32.mrb[5].mxu0 }
 0x19f   : > { %1936 = vst.msk [vmem:[%s2971_s5 + $0x51] sm:$0x1] %vm414_vm8, %v596_v10  ;;  %v737_v16 = vpop.f32.mrb[6].mxu0 }
 0x1a0   : > { %1937 = vst.msk [vmem:[%s2971_s5 + $0x59] sm:$0x1] %vm414_vm8, %v598_v61  ;;  %v740_v17 = vmax.f32 %v735_v14, 0.0  ;;  %v2134_v19 = vpop.f32.mrb[7].mxu0 }
 0x1a2   : > { %v742_v21 = vcombine.high %v740_v17, %v740_v17  ;;  %v749_v23 = vrot.slane %v740_v17, %v2979_v39 }
 0x1a4   : > { %v756_v24 = vrot.slane %v742_v21, %v2979_v39  ;;  %v757_v50 = vcombine.high %v749_v23, %v749_v23  ;;  %v765_v25 = vrot.slane %v749_v23, %v2979_v39 }
 0x1a6   : > { %v758_v18 = vcombine.high %v756_v24, %v756_v24  ;;  %v772_v27 = vrot.slane %v756_v24, %v2979_v39  ;;  %v779_v63 = vrot.slane %v757_v50, %v2979_v39  ;;  %v787_v29 = vcombine.high %v765_v25, %v765_v25  ;;  %1952 = vst.msk [vmem:[%s2971_s5 + $0x22] sm:$0x1] %vm414_vm8, %v765_v25 }
 0x1a8   : > { %v786_v30 = vrot.slane %v758_v18, %v2979_v39  ;;  %v788_v40 = vcombine.high %v772_v27, %v772_v27  ;;  %v789_v31 = vcombine.high %v779_v63, %v779_v63  ;;  %1953 = vst.msk [vmem:[%s2971_s5 + $0x2a] sm:$0x1] %vm414_vm8, %v779_v63  ;;  %1954 = vst.msk [vmem:[%s2971_s5 + $0x32] sm:$0x1] %vm414_vm8, %v787_v29 }
 0x1a9   : > { %1956 = vst.msk [vmem:[%s2971_s5 + $0x42] sm:$0x1] %vm414_vm8, %v772_v27  ;;  %v926_v20 = vpop.f32.mrb[4].mxu1 }
 0x1aa   : > { %v790_v51 = vcombine.high %v786_v30, %v786_v30  ;;  %1955 = vst.msk [vmem:[%s2971_s5 + $0x3a] sm:$0x1] %vm414_vm8, %v789_v31  ;;  %1957 = vst.msk [vmem:[%s2971_s5 + $0x4a] sm:$0x1] %vm414_vm8, %v786_v30  ;;  %v927_v32 = vadd.f32 %v926_v20, %v2974_v48  ;;  %v2143_v33 = vpop.f32.mrb[5].mxu1 }
 0x1ab   : > { %1958 = vst.msk [vmem:[%s2971_s5 + $0x52] sm:$0x1] %vm414_vm8, %v788_v40  ;;  %v929_v35 = vpop.f32.mrb[6].mxu1 }
 0x1ac   : > { %1959 = vst.msk [vmem:[%s2971_s5 + $0x5a] sm:$0x1] %vm414_vm8, %v790_v51  ;;  %v932_v36 = vmax.f32 %v927_v32, 0.0  ;;  %v2144_v52 = vpop.f32.mrb[7].mxu1 }
 0x1ae   : > { %v934_v38 = vcombine.high %v932_v36, %v932_v36  ;;  %v941_v5 = vrot.slane %v932_v36, %v2979_v39 }
 0x1b0   : > { %v948_v62 = vrot.slane %v934_v38, %v2979_v39  ;;  %v949_v13 = vcombine.high %v941_v5, %v941_v5  ;;  %v957_v42 = vrot.slane %v941_v5, %v2979_v39 }
 0x1b2   : > { %v950_v45 = vcombine.high %v948_v62, %v948_v62  ;;  %v964_v8 = vrot.slane %v948_v62, %v2979_v39  ;;  %v971_v41 = vrot.slane %v949_v13, %v2979_v39  ;;  %v979_v46 = vcombine.high %v957_v42, %v957_v42  ;;  %1974 = vst.msk [vmem:[%s2971_s5 + $0x23] sm:$0x1] %vm414_vm8, %v957_v42 }
 0x1b4   : > { %v978_v47 = vrot.slane %v950_v45, %v2979_v39  ;;  %v980_v9 = vcombine.high %v964_v8, %v964_v8  ;;  %v981_v49 = vcombine.high %v971_v41, %v971_v41  ;;  %1975 = vst.msk [vmem:[%s2971_s5 + $0x2b] sm:$0x1] %vm414_vm8, %v971_v41  ;;  %1976 = vst.msk [vmem:[%s2971_s5 + $0x33] sm:$0x1] %vm414_vm8, %v979_v46 }
 0x1b5   : > { %1978 = vst.msk [vmem:[%s2971_s5 + $0x43] sm:$0x1] %vm414_vm8, %v964_v8  ;;  %v1118_v53 = vpop.f32.mrb[8].mxu0 }
 0x1b6   : > { %v982_v22 = vcombine.high %v978_v47, %v978_v47  ;;  %1977 = vst.msk [vmem:[%s2971_s5 + $0x3b] sm:$0x1] %vm414_vm8, %v981_v49  ;;  %1979 = vst.msk [vmem:[%s2971_s5 + $0x4b] sm:$0x1] %vm414_vm8, %v978_v47  ;;  %v1119_v37 = vadd.f32 %v1118_v53, %v2974_v48  ;;  %v2153_v54 = vpop.f32.mrb[9].mxu0 }
 0x1b7   : > { %1980 = vst.msk [vmem:[%s2971_s5 + $0x53] sm:$0x1] %vm414_vm8, %v980_v9  ;;  %v1121_v28 = vpop.f32.mrb[10].mxu0 }
 0x1b8   : > { %1981 = vst.msk [vmem:[%s2971_s5 + $0x5b] sm:$0x1] %vm414_vm8, %v982_v22  ;;  %v1124_v55 = vmax.f32 %v1119_v37, 0.0  ;;  %v2154_v58 = vpop.f32.mrb[11].mxu0 }
 0x1ba   : > { %v1126_v57 = vcombine.high %v1124_v55, %v1124_v55  ;;  %v1133_v59 = vrot.slane %v1124_v55, %v2979_v39 }
 0x1bc   : > { %v1140_v44 = vrot.slane %v1126_v57, %v2979_v39  ;;  %v1141_v60 = vcombine.high %v1133_v59, %v1133_v59  ;;  %v1149_v0 = vrot.slane %v1133_v59, %v2979_v39 }
 0x1be   : > { %v1142_v1 = vcombine.high %v1140_v44, %v1140_v44  ;;  %v1156_v2 = vrot.slane %v1140_v44, %v2979_v39  ;;  %v1163_v3 = vrot.slane %v1141_v60, %v2979_v39  ;;  %v1171_v4 = vcombine.high %v1149_v0, %v1149_v0  ;;  %1996 = vst.msk [vmem:[%s2971_s5 + $0x24] sm:$0x1] %vm414_vm8, %v1149_v0 }
 0x1c0   : > { %v1170_v56 = vrot.slane %v1142_v1, %v2979_v39  ;;  %v1172_v6 = vcombine.high %v1156_v2, %v1156_v2  ;;  %v1173_v7 = vcombine.high %v1163_v3, %v1163_v3  ;;  %1997 = vst.msk [vmem:[%s2971_s5 + $0x2c] sm:$0x1] %vm414_vm8, %v1163_v3  ;;  %1998 = vst.msk [vmem:[%s2971_s5 + $0x34] sm:$0x1] %vm414_vm8, %v1171_v4 }
 0x1c1   : > { %2000 = vst.msk [vmem:[%s2971_s5 + $0x44] sm:$0x1] %vm414_vm8, %v1156_v2  ;;  %v1310_v11 = vpop.f32.mrb[8].mxu1 }
 0x1c2   : > { %v1174_v34 = vcombine.high %v1170_v56, %v1170_v56  ;;  %1999 = vst.msk [vmem:[%s2971_s5 + $0x3c] sm:$0x1] %vm414_vm8, %v1173_v7  ;;  %2001 = vst.msk [vmem:[%s2971_s5 + $0x4c] sm:$0x1] %vm414_vm8, %v1170_v56  ;;  %v1311_v43 = vadd.f32 %v1310_v11, %v2974_v48  ;;  %v2163_v10 = vpop.f32.mrb[9].mxu1 }
 0x1c3   : > { %2002 = vst.msk [vmem:[%s2971_s5 + $0x54] sm:$0x1] %vm414_vm8, %v1172_v6  ;;  %v1313_v12 = vpop.f32.mrb[10].mxu1 }
 0x1c4   : > { %2003 = vst.msk [vmem:[%s2971_s5 + $0x5c] sm:$0x1] %vm414_vm8, %v1174_v34  ;;  %v1316_v26 = vmax.f32 %v1311_v43, 0.0  ;;  %v2164_v61 = vpop.f32.mrb[11].mxu1 }
 0x1c6   : > { %v1318_v14 = vcombine.high %v1316_v26, %v1316_v26  ;;  %v1325_v15 = vrot.slane %v1316_v26, %v2979_v39 }
 0x1c8   : > { %v1332_v16 = vrot.slane %v1318_v14, %v2979_v39  ;;  %v1333_v17 = vcombine.high %v1325_v15, %v1325_v15  ;;  %v1341_v19 = vrot.slane %v1325_v15, %v2979_v39 }
 0x1ca   : > { %v1334_v21 = vcombine.high %v1332_v16, %v1332_v16  ;;  %v1348_v23 = vrot.slane %v1332_v16, %v2979_v39  ;;  %v1355_v24 = vrot.slane %v1333_v17, %v2979_v39  ;;  %v1363_v50 = vcombine.high %v1341_v19, %v1341_v19  ;;  %2018 = vst.msk [vmem:[%s2971_s5 + $0x25] sm:$0x1] %vm414_vm8, %v1341_v19 }
 0x1cc   : > { %v1362_v25 = vrot.slane %v1334_v21, %v2979_v39  ;;  %v1364_v18 = vcombine.high %v1348_v23, %v1348_v23  ;;  %v1365_v27 = vcombine.high %v1355_v24, %v1355_v24  ;;  %2019 = vst.msk [vmem:[%s2971_s5 + $0x2d] sm:$0x1] %vm414_vm8, %v1355_v24  ;;  %2020 = vst.msk [vmem:[%s2971_s5 + $0x35] sm:$0x1] %vm414_vm8, %v1363_v50 }
 0x1cd   : > { %2022 = vst.msk [vmem:[%s2971_s5 + $0x45] sm:$0x1] %vm414_vm8, %v1348_v23  ;;  %v1502_v63 = vpop.f32.mrb[12].mxu0 }
 0x1ce   : > { %v1366_v29 = vcombine.high %v1362_v25, %v1362_v25  ;;  %2021 = vst.msk [vmem:[%s2971_s5 + $0x3d] sm:$0x1] %vm414_vm8, %v1365_v27  ;;  %2023 = vst.msk [vmem:[%s2971_s5 + $0x4d] sm:$0x1] %vm414_vm8, %v1362_v25  ;;  %v1503_v30 = vadd.f32 %v1502_v63, %v2974_v48  ;;  %v2173_v40 = vpop.f32.mrb[13].mxu0 }
 0x1cf   : > { %2024 = vst.msk [vmem:[%s2971_s5 + $0x55] sm:$0x1] %vm414_vm8, %v1364_v18  ;;  %v1505_v31 = vpop.f32.mrb[14].mxu0 }
 0x1d0   : > { %2025 = vst.msk [vmem:[%s2971_s5 + $0x5d] sm:$0x1] %vm414_vm8, %v1366_v29  ;;  %v1508_v20 = vmax.f32 %v1503_v30, 0.0  ;;  %v2174_v51 = vpop.f32.mrb[15].mxu0 }
 0x1d2   : > { %v1510_v32 = vcombine.high %v1508_v20, %v1508_v20  ;;  %v1517_v33 = vrot.slane %v1508_v20, %v2979_v39 }
 0x1d4   : > { %v1524_v35 = vrot.slane %v1510_v32, %v2979_v39  ;;  %v1525_v36 = vcombine.high %v1517_v33, %v1517_v33  ;;  %v1533_v52 = vrot.slane %v1517_v33, %v2979_v39 }
 0x1d6   : > { %v1526_v38 = vcombine.high %v1524_v35, %v1524_v35  ;;  %v1540_v5 = vrot.slane %v1524_v35, %v2979_v39  ;;  %v1547_v62 = vrot.slane %v1525_v36, %v2979_v39  ;;  %v1555_v13 = vcombine.high %v1533_v52, %v1533_v52  ;;  %2040 = vst.msk [vmem:[%s2971_s5 + $0x26] sm:$0x1] %vm414_vm8, %v1533_v52 }
 0x1d8   : > { %v1554_v42 = vrot.slane %v1526_v38, %v2979_v39  ;;  %v1556_v45 = vcombine.high %v1540_v5, %v1540_v5  ;;  %v1557_v8 = vcombine.high %v1547_v62, %v1547_v62  ;;  %2041 = vst.msk [vmem:[%s2971_s5 + $0x2e] sm:$0x1] %vm414_vm8, %v1547_v62  ;;  %2042 = vst.msk [vmem:[%s2971_s5 + $0x36] sm:$0x1] %vm414_vm8, %v1555_v13 }
 0x1d9   : > { %2044 = vst.msk [vmem:[%s2971_s5 + $0x46] sm:$0x1] %vm414_vm8, %v1540_v5  ;;  %v1694_v41 = vpop.f32.mrb[12].mxu1 }
 0x1da   : > { %v1558_v46 = vcombine.high %v1554_v42, %v1554_v42  ;;  %2043 = vst.msk [vmem:[%s2971_s5 + $0x3e] sm:$0x1] %vm414_vm8, %v1557_v8  ;;  %2045 = vst.msk [vmem:[%s2971_s5 + $0x4e] sm:$0x1] %vm414_vm8, %v1554_v42  ;;  %v1695_v47 = vadd.f32 %v1694_v41, %v2974_v48  ;;  %v2183_v9 = vpop.f32.mrb[13].mxu1 }
 0x1db   : > { %2046 = vst.msk [vmem:[%s2971_s5 + $0x56] sm:$0x1] %vm414_vm8, %v1556_v45  ;;  %v1697_v49 = vpop.f32.mrb[14].mxu1 }
 0x1dc   : > { %2047 = vst.msk [vmem:[%s2971_s5 + $0x5e] sm:$0x1] %vm414_vm8, %v1558_v46  ;;  %v1700_v53 = vmax.f32 %v1695_v47, 0.0  ;;  %v2184_v22 = vpop.f32.mrb[15].mxu1 }
 0x1de   : > { %v1702_v37 = vcombine.high %v1700_v53, %v1700_v53  ;;  %v1709_v54 = vrot.slane %v1700_v53, %v2979_v39 }
 0x1e0   : > { %v1716_v28 = vrot.slane %v1702_v37, %v2979_v39  ;;  %v1717_v55 = vcombine.high %v1709_v54, %v1709_v54  ;;  %v1725_v48 = vrot.slane %v1709_v54, %v2979_v39 }
 0x1e2   : > { %v1718_v58 = vcombine.high %v1716_v28, %v1716_v28  ;;  %v1732_v57 = vrot.slane %v1716_v28, %v2979_v39  ;;  %v1739_v59 = vrot.slane %v1717_v55, %v2979_v39  ;;  %v1747_v44 = vcombine.high %v1725_v48, %v1725_v48  ;;  %2062 = vst.msk [vmem:[%s2971_s5 + $0x27] sm:$0x1] %vm414_vm8, %v1725_v48 }
 0x1e4   : > { %v1746_v60 = vrot.slane %v1718_v58, %v2979_v39  ;;  %v1748_v0 = vcombine.high %v1732_v57, %v1732_v57  ;;  %v1749_v1 = vcombine.high %v1739_v59, %v1739_v59  ;;  %2063 = vst.msk [vmem:[%s2971_s5 + $0x2f] sm:$0x1] %vm414_vm8, %v1739_v59  ;;  %2064 = vst.msk [vmem:[%s2971_s5 + $0x37] sm:$0x1] %vm414_vm8, %v1747_v44 }
 0x1e5   : > { %2066 = vst.msk [vmem:[%s2971_s5 + $0x47] sm:$0x1] %vm414_vm8, %v1732_v57 }
 0x1e6   : > { %v1750_v39 = vcombine.high %v1746_v60, %v1746_v60  ;;  %2065 = vst.msk [vmem:[%s2971_s5 + $0x3f] sm:$0x1] %vm414_vm8, %v1749_v1  ;;  %2067 = vst.msk [vmem:[%s2971_s5 + $0x4f] sm:$0x1] %vm414_vm8, %v1746_v60 }
 0x1e7   : > { %2068 = vst.msk [vmem:[%s2971_s5 + $0x57] sm:$0x1] %vm414_vm8, %v1748_v0 }
 0x1e8   : > { %2069 = vst.msk [vmem:[%s2971_s5 + $0x5f] sm:$0x1] %vm414_vm8, %v1750_v39 }
 0x1e9   : > { %2282 = shalt.err (!%p2279_p6)
}
 0x1ea   : > { %s2283_s28 = scalar_lea.hbm %s3163_s10, 1536  ;;  %s2287_s5 = scalar_lea.hbm %s3232_s3, 6144 }
 0x1eb   : > { %p2284_p7 = scmp.ne.s32.totalorder %s3163_s10, %s2283_s28  ;;  %p2288_p11 = scmp.lt.u32.totalorder %s3163_s10, %s3232_s3 }
 0x1ec   : > { %p2289_p12 = scmp.lt.u32.totalorder %s2287_s5, %s2283_s28  ;;  %p2291_p0 = scmp.lt.u32.totalorder %s2283_s28, %s3163_s10 }
 0x1ed   : > { %p2285_p9 = pnand %p2284_p7, %p2446_p3 }
 0x1ee   : > { %p2290_p13 = por %p2289_p12, %p2288_p11 }
 0x1ef   : > { %p2286_p10 = pneg %p2285_p9 }
 0x1f0   : > { %p2292_p1 = por %p2291_p0, %p2290_p13 }
 0x1f2   : > { %p2293_p2 = pnand %p2292_p1, %p2286_p10 }
 0x1f4   : > { %2296 = shalt.err (!%p2293_p2)
}
 0x1f5   : > { %s2372_s16 = smov 128   ;;  %s2373_s8 = smov 256  }
 0x1f6   : > { %s2374_s9 = smov 8  }
 0x1f7   : > { %2188 = dma.vmem_to_hbm [thread:$0]  (%p2446_p3), %s3165_s15, 1536, %s3163_s10, %s3177_s11, %s2372_s16, %s2373_s8, %s2374_s9  }
 0x1f8 PF: > { %p2194_p4 = scmp.ge.s32.totalorder %s2363_s19, 2  ;;  %s1797_s20 = sand.u32 1, %s2335_s12  }
 0x1f9   : > { %s1798_s21 = scalar_lea.sflag [#allocation4], %s1797_s20 }
 0x1fa   : > { %p2191_p5 = pnand %p2194_p4, %p2455_p8 }
 0x1fc   : > { %2330 = dma.done.wait (!%p2191_p5), %s1798_s21, 1536  }
 0x1fd   : > { %2332 = vsyncadd (!%p2191_p5), %s1798_s21, 4294965760  ;;  %s16_s19 = sadd.s32 1, %s2363_s19   ;;  %s3235_s12 = smov %s2339_s13 }
 0x1fe   : > { %p13_p6 = scmp.ge.s32.totalorder %s16_s19, 6   ;;  %s3236_s13 = smov %s2343_s14 }
 0x1ff   : > { %s3237_s14 = smov %s2464_s30  ;;  %s3238_s15 = smov %s2355_s17 }
 0x200   : > { %s3239_s16 = smov %s2359_s18  ;;  %s3240_s17 = smov %s3243_s22 }
 0x201   : > { %s3241_s18 = smov %s3247_s23  ;;  %15 = sbr.rel (!%p13_p6) target bundleno = 5 (0x5), region = 78 }
 0x208   :  { %1803 = vsyncpa [#allocation4], 1 }
 0x209   :  { %1805 = vsyncpa [#allocation4 + $0x1], 1 }

</bundles_post_ra>
